<compile_context>
chip_gen: v7x
topology: tpu7x:2x2x1
jax: 0.10.0
libtpu: 0.0.40
codegen_flags: <defaults>
</compile_context>

<pallas_src>
import jax
import jax.numpy as jnp
import numpy as np
from jax.experimental import pallas as pl
from jax.experimental.pallas import tpu as pltpu


def _bottleneck_kernel(x_ref, w1_ref, b1_ref, w2_ref, b2_ref, w3_ref, b3_ref,
                       out_ref, padh_ref):
    """One (image, H-tile) per grid step; channel dims kept whole (padded to CP)."""
    h_idx = pl.program_id(1)
    n_h = pl.num_programs(1)

    H, W, Cin = x_ref.shape[1], x_ref.shape[2], x_ref.shape[3]
    TH = out_ref.shape[1]
    CP = w1_ref.shape[1]            # lane-padded bottleneck width
    Cout = w3_ref.shape[1]

    start = h_idx * TH
    w1 = w1_ref[...]                # (Cin, CP)  bf16
    b1 = b1_ref[...]                # (1, CP)    f32

    # ---- conv1 (1x1, BN1 folded) + bias + relu on this tile's TH rows -------
    xm = x_ref[0, pl.ds(start, TH)]                          # (TH, W, Cin) bf16
    h1 = jnp.dot(xm.reshape(TH * W, Cin), w1,
                 preferred_element_type=jnp.float32)
    h1 = jnp.maximum(h1 + b1, 0.0)
    padh_ref[pl.ds(1, TH)] = h1.reshape(TH, W, CP).astype(padh_ref.dtype)

    # ---- halo rows: recompute conv1 for 1 row above / below the tile --------
    def conv1_row(row):
        xr = x_ref[0, pl.ds(row, 1)]                         # (1, W, Cin) bf16
        r = jnp.dot(xr.reshape(W, Cin), w1, preferred_element_type=jnp.float32)
        return jnp.maximum(r + b1, 0.0).reshape(1, W, CP).astype(padh_ref.dtype)

    zrow = jnp.zeros((1, W, CP), padh_ref.dtype)

    @pl.when(h_idx > 0)
    def _():
        padh_ref[pl.ds(0, 1)] = conv1_row(start - 1)

    @pl.when(h_idx == 0)
    def _():
        padh_ref[pl.ds(0, 1)] = zrow

    @pl.when(h_idx < n_h - 1)
    def _():
        padh_ref[pl.ds(TH + 1, 1)] = conv1_row(start + TH)

    @pl.when(h_idx == n_h - 1)
    def _():
        padh_ref[pl.ds(TH + 1, 1)] = zrow

    # ---- conv2 (3x3, pad=1, stride=1, BN2 folded) ----------------------------
    # w2_ref is dx-stacked: (3_dy, CP, 3*CP) with lane-aligned columns
    # [dx=0 | dx=1 | dx=2]. Each dy tap reads a contiguous (TH, W, CP) slice of
    # the H-padded scratch and produces a lane-dense (TH*W, 3*CP) result.
    w2s = w2_ref[...]                                        # (3, CP, 3CP) bf16

    def tap(dy):
        rows = padh_ref[pl.ds(dy, TH)]                       # (TH, W, CP) bf16
        return jnp.dot(rows.reshape(TH * W, CP), w2s[dy],
                       preferred_element_type=jnp.float32)

    acc = (tap(0) + tap(1) + tap(2)).reshape(TH, W, 3 * CP)  # f32

    s_l = acc[:, :, 0:CP]
    s_m = acc[:, :, CP:2 * CP]
    s_r = acc[:, :, 2 * CP:3 * CP]

    # Combine the dx taps with column rotations (XLU) + a one-column mask (VPU)
    # instead of materializing shifted concatenated copies.
    wcol = jax.lax.broadcasted_iota(jnp.int32, (TH, W, 1), 1)
    conv2 = (s_m
             + jnp.where(wcol == 0, 0.0, pltpu.roll(s_l, 1, axis=1))
             + jnp.where(wcol == W - 1, 0.0, pltpu.roll(s_r, W - 1, axis=1)))

    # bias + relu + bf16 cast fused -> no standalone f32 h2 buffer
    h2 = jnp.maximum(conv2.reshape(TH * W, CP) + b2_ref[...], 0.0
                     ).astype(jnp.bfloat16)

    # ---- conv3 (1x1, BN3 folded) + bias --------------------------------------
    h3 = jnp.dot(h2, w3_ref[...], preferred_element_type=jnp.float32) + b3_ref[...]

    # ---- identity residual add (f32) + relu, emit bf16 -----------------------
    res = xm.astype(jnp.float32)                             # (TH, W, Cin==Cout)
    out_ref[0] = jnp.maximum(h3.reshape(TH, W, Cout) + res, 0.0
                             ).astype(out_ref.dtype)


def _default_tile_h(H):
    for cand in (16, 14, 8, 7):
        if H % cand == 0:
            return cand
    return H


def bottleneck_pallas(x_nhwc, params, *, tile_h=None):
    """x_nhwc: (N, H, W, Cin) bfloat16 (channels-last), Cin == 4 * out_channel.

    Returns (N, H, W, Cin) bfloat16. No layout transposes are performed here --
    keep activations NHWC/bf16 end-to-end in the surrounding model.
    """
    N, H, W, Cin = x_nhwc.shape
    CP = params["w1"].shape[1]          # lane-padded bottleneck width
    Cout = params["w3"].shape[1]
    assert Cin == Cout, "identity residual requires Cin == 4 * out_channel"

    if tile_h is None:
        tile_h = _default_tile_h(H)
    assert H % tile_h == 0
    n_h = H // tile_h

    # VMEM budget: double-buffered bf16 in/out blocks + bf16 weights + padded
    # scratch + f32 intermediates (with 2x headroom); clamped to [16, 48] MiB so
    # it leaves room for compiler-internal scratch on v7x's 64 MiB VMEM.
    weight_bytes = (Cin * CP + 3 * CP * 3 * CP + CP * Cout) * 2 + (2 * CP + Cout) * 4
    io_bytes = 2 * H * W * Cin * 2 + 2 * tile_h * W * Cout * 2
    scratch_bytes = (tile_h + 2) * W * CP * 2
    f32_tmp = tile_h * W * (3 * CP + 2 * CP + 2 * Cout) * 4
    est = weight_bytes + io_bytes + scratch_bytes + 2 * f32_tmp
    vmem_limit = int(min(max(est, 16 * 1024 * 1024), 48 * 1024 * 1024))

    full = lambda shape: pl.BlockSpec(shape, lambda n, h: (0,) * len(shape))
    grid_spec = pltpu.PrefetchScalarGridSpec(
        num_scalar_prefetch=0,
        grid=(N, n_h),
        in_specs=[
            # Full image stays resident across the h axis (fetched once per n).
            pl.BlockSpec((1, H, W, Cin), lambda n, h: (n, 0, 0, 0)),
            full((Cin, CP)), full((1, CP)),
            full((3, CP, 3 * CP)), full((1, CP)),
            full((CP, Cout)), full((1, Cout)),
        ],
        out_specs=pl.BlockSpec((1, tile_h, W, Cout), lambda n, h: (n, h, 0, 0)),
        scratch_shapes=[pltpu.VMEM((tile_h + 2, W, CP), jnp.bfloat16)],
    )
    return pl.pallas_call(
        _bottleneck_kernel,
        out_shape=jax.ShapeDtypeStruct((N, H, W, Cout), jnp.bfloat16),
        grid_spec=grid_spec,
        compiler_params=pltpu.CompilerParams(
            dimension_semantics=("parallel", "arbitrary"),
            vmem_limit_bytes=vmem_limit),
    )(x_nhwc,
      params["w1"], params["b1"],
      params["w2"], params["b2"],
      params["w3"], params["b3"])


# --------------------------- parameter setup (glue) ---------------------------

def _round_up(v, m):
    return ((v + m - 1) // m) * m


def make_params(key, in_channel, out_channel):
    assert in_channel == 4 * out_channel, "identity residual requires Cin == 4*C"
    C, Cin, Cout = out_channel, in_channel, 4 * out_channel
    CP = _round_up(C, 128)              # lane-pad the bottleneck width
    eps = 1e-5
    ks = jax.random.split(key, 15)

    # PyTorch-layout conv weights (OIHW).
    w1_t = 0.1 * jax.random.normal(ks[0], (C, Cin, 1, 1), jnp.float32)
    w2_t = 0.1 * jax.random.normal(ks[1], (C, C, 3, 3), jnp.float32)
    w3_t = 0.1 * jax.random.normal(ks[2], (Cout, C, 1, 1), jnp.float32)

    def bn(kg, kb, km, kv, n):
        gamma = 1.0 + 0.1 * jax.random.normal(kg, (n,), jnp.float32)
        beta = 0.1 * jax.random.normal(kb, (n,), jnp.float32)
        mean = 0.1 * jax.random.normal(km, (n,), jnp.float32)
        var = 0.5 + jnp.abs(jax.random.normal(kv, (n,), jnp.float32))
        scale = gamma / jnp.sqrt(var + eps)
        bias = beta - mean * scale
        return gamma, beta, mean, var, scale, bias

    bn1 = bn(ks[3], ks[4], ks[5], ks[6], C)
    bn2 = bn(ks[7], ks[8], ks[9], ks[10], C)
    bn3 = bn(ks[11], ks[12], ks[13], ks[14], Cout)

    # Fold the eval-mode BN scale into the conv weights (host side, once), pad
    # the bottleneck channel dim to CP lanes with zeros, cast to bf16.
    w1 = jnp.transpose(w1_t[:, :, 0, 0]) * bn1[4][None, :]                     # (Cin, C)
    w1p = jnp.zeros((Cin, CP), jnp.float32).at[:, :C].set(w1)
    b1p = jnp.zeros((1, CP), jnp.float32).at[0, :C].set(bn1[5])

    w2_hwio = jnp.transpose(w2_t, (2, 3, 1, 0)) * bn2[4][None, None, None, :]  # (3,3,C,C)
    w2p = jnp.zeros((3, 3, CP, CP), jnp.float32).at[:, :, :C, :C].set(w2_hwio)
    w2_stacked = jnp.transpose(w2p, (0, 2, 1, 3)).reshape(3, CP, 3 * CP)       # (3_dy, CP, 3_dx*CP)
    b2p = jnp.zeros((1, CP), jnp.float32).at[0, :C].set(bn2[5])

    w3 = jnp.transpose(w3_t[:, :, 0, 0]) * bn3[4][None, :]                     # (C, Cout)
    w3p = jnp.zeros((CP, Cout), jnp.float32).at[:C, :].set(w3)
    b3p = bn3[5][None, :]

    params = {
        "w1": w1p.astype(jnp.bfloat16), "b1": b1p,
        "w2": w2_stacked.astype(jnp.bfloat16), "b2": b2p,
        "w3": w3p.astype(jnp.bfloat16), "b3": b3p,
        # raw params for the pure-JAX reference implementation
        "_torch": (w1_t, w2_t, w3_t, bn1, bn2, bn3, eps),
    }
    return params


def bottleneck_reference(x, params):
    """Pure-JAX NCHW f32 reference mirroring the PyTorch module (eval-mode BN)."""
    w1_t, w2_t, w3_t, bn1, bn2, bn3, eps = params["_torch"]
    dn = ("NCHW", "OIHW", "NCHW")

    def bn_apply(y, bnp):
        gamma, beta, mean, var = bnp[0], bnp[1], bnp[2], bnp[3]
        r = lambda v: v.reshape(1, -1, 1, 1)
        return (y - r(mean)) / jnp.sqrt(r(var) + eps) * r(gamma) + r(beta)

    out = jax.lax.conv_general_dilated(x, w1_t, (1, 1), "VALID",
                                       dimension_numbers=dn)
    out = jnp.maximum(bn_apply(out, bn1), 0.0)
    out = jax.lax.conv_general_dilated(out, w2_t, (1, 1), ((1, 1), (1, 1)),
                                       dimension_numbers=dn)
    out = jnp.maximum(bn_apply(out, bn2), 0.0)
    out = jax.lax.conv_general_dilated(out, w3_t, (1, 1), "VALID",
                                       dimension_numbers=dn)
    out = bn_apply(out, bn3)
    return jnp.maximum(out + x, 0.0)


if __name__ == "__main__":
    N, out_channel = 2, 4
    in_channel = out_channel * 4            # 16, so the identity residual is valid
    H = W = 16
    TILE_H = 8                              # exercises both halo branches (grid h = 2)

    key = jax.random.PRNGKey(0)
    kx, kp = jax.random.split(key)
    x_nchw = jax.random.normal(kx, (N, in_channel, H, W), jnp.float32)
    params = make_params(kp, in_channel, out_channel)

    # Channels-last bf16 activation path (the surrounding model should keep
    # activations in this layout/dtype; this transpose/cast is test-harness glue,
    # not part of the kernel pipeline).
    x_nhwc = jnp.transpose(x_nchw, (0, 2, 3, 1)).astype(jnp.bfloat16)

    out_nhwc = jax.block_until_ready(bottleneck_pallas(x_nhwc, params, tile_h=TILE_H))

    # Reference on the same bf16-quantized input (isolates kernel arithmetic error).
    x_ref_in = jnp.transpose(x_nhwc.astype(jnp.float32), (0, 3, 1, 2))
    ref_nchw = jax.block_until_ready(bottleneck_reference(x_ref_in, params))
    ref_nhwc = jnp.transpose(ref_nchw, (0, 2, 3, 1))

    assert out_nhwc.shape == (N, H, W, in_channel)
    # bf16 activations/weights (f32 accumulation) vs. a pure-f32 reference ->
    # tolerance loosened accordingly.
    np.testing.assert_allclose(np.asarray(out_nhwc, dtype=np.float32),
                               np.asarray(ref_nhwc),
                               rtol=5e-2, atol=1e-1)
    print("KERNEL_OK")
</pallas_src>

<mosaic_0001>
module attributes {stable_mosaic.version = 11 : i64} {
  func.func @_bottleneck_kernel(%arg0: i32, %arg1: i32, %arg2: memref<1x16x16x16xbf16, #tpu.memory_space<vmem>>, %arg3: memref<16x128xbf16, #tpu.memory_space<vmem>>, %arg4: memref<1x128xf32, #tpu.memory_space<vmem>>, %arg5: memref<3x128x384xbf16, #tpu.memory_space<vmem>>, %arg6: memref<1x128xf32, #tpu.memory_space<vmem>>, %arg7: memref<128x16xbf16, #tpu.memory_space<vmem>>, %arg8: memref<1x16xf32, #tpu.memory_space<vmem>>, %arg9: memref<1x8x16x16xbf16, #tpu.memory_space<vmem>>, %arg10: memref<10x16x128xbf16, #tpu.memory_space<vmem>>) attributes {dimension_semantics = [#tpu.dimension_semantics<parallel>, #tpu.dimension_semantics<arbitrary>], iteration_bounds = array<i64: 2, 2>, scalar_prefetch = 0 : i64, scratch_operands = 1 : i64, tpu.core_type = #tpu.core_type<tc>, window_params = [{transform_indices = @transform_0, window_bounds = array<i64: 1, 16, 16, 16>}, {pipeline_mode = #tpu.pipeline_mode<synchronous>, transform_indices = @transform_1, window_bounds = array<i64: 16, 128>}, {pipeline_mode = #tpu.pipeline_mode<synchronous>, transform_indices = @transform_2, window_bounds = array<i64: 1, 128>}, {pipeline_mode = #tpu.pipeline_mode<synchronous>, transform_indices = @transform_3, window_bounds = array<i64: 3, 128, 384>}, {pipeline_mode = #tpu.pipeline_mode<synchronous>, transform_indices = @transform_4, window_bounds = array<i64: 1, 128>}, {pipeline_mode = #tpu.pipeline_mode<synchronous>, transform_indices = @transform_5, window_bounds = array<i64: 128, 16>}, {pipeline_mode = #tpu.pipeline_mode<synchronous>, transform_indices = @transform_6, window_bounds = array<i64: 1, 16>}, {transform_indices = @transform_7, window_bounds = array<i64: 1, 8, 16, 16>}]} {
    %c8_i32 = arith.constant 8 : i32
    %0 = arith.muli %arg1, %c8_i32 : i32
    %c0 = arith.constant 0 : index
    %c0_0 = arith.constant 0 : index
    %1 = vector.load %arg3[%c0, %c0_0] : memref<16x128xbf16, #tpu.memory_space<vmem>>, vector<16x128xbf16>
    %c0_1 = arith.constant 0 : index
    %c0_2 = arith.constant 0 : index
    %2 = vector.load %arg4[%c0_1, %c0_2] : memref<1x128xf32, #tpu.memory_space<vmem>>, vector<1x128xf32>
    %c0_3 = arith.constant 0 : index
    %3 = arith.index_cast %0 : i32 to index
    %c0_4 = arith.constant 0 : index
    %c0_5 = arith.constant 0 : index
    %4 = vector.load %arg2[%c0_3, %3, %c0_4, %c0_5] : memref<1x16x16x16xbf16, #tpu.memory_space<vmem>>, vector<1x8x16x16xbf16>
    %5 = vector.shape_cast %4 : vector<1x8x16x16xbf16> to vector<8x16x16xbf16>
    %6 = vector.shape_cast %5 : vector<8x16x16xbf16> to vector<128x16xbf16>
    %cst = arith.constant dense<0.000000e+00> : vector<128x128xf32>
    %7 = tpu.matmul %6, %1, %cst {dimension_numbers = #tpu.dot_dimension_numbers<[1], [0], [0], [1], [0, 0, 1, 1], [], []>} : vector<128x16xbf16>, vector<16x128xbf16>, vector<128x128xf32> -> vector<128x128xf32>
    %8 = vector.broadcast %2 : vector<1x128xf32> to vector<128x128xf32>
    %9 = arith.addf %7, %8 : vector<128x128xf32>
    %cst_6 = arith.constant 0.000000e+00 : f32
    %10 = vector.broadcast %cst_6 : f32 to vector<128x128xf32>
    %11 = arith.maximumf %9, %10 : vector<128x128xf32>
    %12 = vector.shape_cast %11 : vector<128x128xf32> to vector<8x16x128xf32>
    %13 = arith.truncf %12 : vector<8x16x128xf32> to vector<8x16x128xbf16>
    %c1 = arith.constant 1 : index
    %c0_7 = arith.constant 0 : index
    %c0_8 = arith.constant 0 : index
    %14 = vector.load %arg10[%c1, %c0_7, %c0_8] : memref<10x16x128xbf16, #tpu.memory_space<vmem>>, vector<8x16x128xbf16>
    tpu.vector_store %arg10[%c1, %c0_7, %c0_8], %13 {strides = array<i32>} : memref<10x16x128xbf16, #tpu.memory_space<vmem>>, vector<8x16x128xbf16>,
    %cst_9 = arith.constant 0.000000e+00 : bf16
    %15 = vector.broadcast %cst_9 : bf16 to vector<1x16x128xbf16>
    %c0_i32 = arith.constant 0 : i32
    %16 = arith.cmpi sgt, %arg1, %c0_i32 : i32
    %17 = arith.extui %16 : i1 to i32
    %c0_i32_10 = arith.constant 0 : i32
    %18 = arith.cmpi ne, %17, %c0_i32_10 : i32
    scf.if %18 {
      %c1_i32_48 = arith.constant 1 : i32
      %88 = arith.subi %0, %c1_i32_48 : i32
      %c0_49 = arith.constant 0 : index
      %89 = arith.index_cast %88 : i32 to index
      %c0_50 = arith.constant 0 : index
      %c0_51 = arith.constant 0 : index
      %90 = vector.load %arg2[%c0_49, %89, %c0_50, %c0_51] : memref<1x16x16x16xbf16, #tpu.memory_space<vmem>>, vector<1x1x16x16xbf16>
      %91 = vector.shape_cast %90 : vector<1x1x16x16xbf16> to vector<1x16x16xbf16>
      %92 = vector.shape_cast %91 : vector<1x16x16xbf16> to vector<16x16xbf16>
      %cst_52 = arith.constant dense<0.000000e+00> : vector<16x128xf32>
      %93 = tpu.matmul %92, %1, %cst_52 {dimension_numbers = #tpu.dot_dimension_numbers<[1], [0], [0], [1], [0, 0, 1, 1], [], []>} : vector<16x16xbf16>, vector<16x128xbf16>, vector<16x128xf32> -> vector<16x128xf32>
      %94 = vector.broadcast %2 : vector<1x128xf32> to vector<16x128xf32>
      %95 = arith.addf %93, %94 : vector<16x128xf32>
      %cst_53 = arith.constant 0.000000e+00 : f32
      %96 = vector.broadcast %cst_53 : f32 to vector<16x128xf32>
      %97 = arith.maximumf %95, %96 : vector<16x128xf32>
      %98 = vector.shape_cast %97 : vector<16x128xf32> to vector<1x16x128xf32>
      %99 = arith.truncf %98 : vector<1x16x128xf32> to vector<1x16x128xbf16>
      %c0_54 = arith.constant 0 : index
      %c0_55 = arith.constant 0 : index
      %c0_56 = arith.constant 0 : index
      %100 = vector.load %arg10[%c0_54, %c0_55, %c0_56] : memref<10x16x128xbf16, #tpu.memory_space<vmem>>, vector<1x16x128xbf16>
      tpu.vector_store %arg10[%c0_54, %c0_55, %c0_56], %99 {strides = array<i32>} : memref<10x16x128xbf16, #tpu.memory_space<vmem>>, vector<1x16x128xbf16>,
    } else {
    }
    %c0_i32_11 = arith.constant 0 : i32
    %19 = arith.cmpi eq, %arg1, %c0_i32_11 : i32
    %20 = arith.extui %19 : i1 to i32
    %c0_i32_12 = arith.constant 0 : i32
    %21 = arith.cmpi ne, %20, %c0_i32_12 : i32
    scf.if %21 {
      %c0_48 = arith.constant 0 : index
      %c0_49 = arith.constant 0 : index
      %c0_50 = arith.constant 0 : index
      %88 = vector.load %arg10[%c0_48, %c0_49, %c0_50] : memref<10x16x128xbf16, #tpu.memory_space<vmem>>, vector<1x16x128xbf16>
      tpu.vector_store %arg10[%c0_48, %c0_49, %c0_50], %15 {strides = array<i32>} : memref<10x16x128xbf16, #tpu.memory_space<vmem>>, vector<1x16x128xbf16>,
    } else {
    }
    %c1_i32 = arith.constant 1 : i32
    %22 = arith.cmpi slt, %arg1, %c1_i32 : i32
    %23 = arith.extui %22 : i1 to i32
    %c0_i32_13 = arith.constant 0 : i32
    %24 = arith.cmpi ne, %23, %c0_i32_13 : i32
    scf.if %24 {
      %c8_i32_48 = arith.constant 8 : i32
      %88 = arith.addi %0, %c8_i32_48 : i32
      %c0_49 = arith.constant 0 : index
      %89 = arith.index_cast %88 : i32 to index
      %c0_50 = arith.constant 0 : index
      %c0_51 = arith.constant 0 : index
      %90 = vector.load %arg2[%c0_49, %89, %c0_50, %c0_51] : memref<1x16x16x16xbf16, #tpu.memory_space<vmem>>, vector<1x1x16x16xbf16>
      %91 = vector.shape_cast %90 : vector<1x1x16x16xbf16> to vector<1x16x16xbf16>
      %92 = vector.shape_cast %91 : vector<1x16x16xbf16> to vector<16x16xbf16>
      %cst_52 = arith.constant dense<0.000000e+00> : vector<16x128xf32>
      %93 = tpu.matmul %92, %1, %cst_52 {dimension_numbers = #tpu.dot_dimension_numbers<[1], [0], [0], [1], [0, 0, 1, 1], [], []>} : vector<16x16xbf16>, vector<16x128xbf16>, vector<16x128xf32> -> vector<16x128xf32>
      %94 = vector.broadcast %2 : vector<1x128xf32> to vector<16x128xf32>
      %95 = arith.addf %93, %94 : vector<16x128xf32>
      %cst_53 = arith.constant 0.000000e+00 : f32
      %96 = vector.broadcast %cst_53 : f32 to vector<16x128xf32>
      %97 = arith.maximumf %95, %96 : vector<16x128xf32>
      %98 = vector.shape_cast %97 : vector<16x128xf32> to vector<1x16x128xf32>
      %99 = arith.truncf %98 : vector<1x16x128xf32> to vector<1x16x128xbf16>
      %c9 = arith.constant 9 : index
      %c0_54 = arith.constant 0 : index
      %c0_55 = arith.constant 0 : index
      %100 = vector.load %arg10[%c9, %c0_54, %c0_55] : memref<10x16x128xbf16, #tpu.memory_space<vmem>>, vector<1x16x128xbf16>
      tpu.vector_store %arg10[%c9, %c0_54, %c0_55], %99 {strides = array<i32>} : memref<10x16x128xbf16, #tpu.memory_space<vmem>>, vector<1x16x128xbf16>,
    } else {
    }
    %c1_i32_14 = arith.constant 1 : i32
    %25 = arith.cmpi eq, %arg1, %c1_i32_14 : i32
    %26 = arith.extui %25 : i1 to i32
    %c0_i32_15 = arith.constant 0 : i32
    %27 = arith.cmpi ne, %26, %c0_i32_15 : i32
    scf.if %27 {
      %c9 = arith.constant 9 : index
      %c0_48 = arith.constant 0 : index
      %c0_49 = arith.constant 0 : index
      %88 = vector.load %arg10[%c9, %c0_48, %c0_49] : memref<10x16x128xbf16, #tpu.memory_space<vmem>>, vector<1x16x128xbf16>
      tpu.vector_store %arg10[%c9, %c0_48, %c0_49], %15 {strides = array<i32>} : memref<10x16x128xbf16, #tpu.memory_space<vmem>>, vector<1x16x128xbf16>,
    } else {
    }
    %c0_16 = arith.constant 0 : index
    %c0_17 = arith.constant 0 : index
    %c0_18 = arith.constant 0 : index
    %28 = vector.load %arg5[%c0_16, %c0_17, %c0_18] : memref<3x128x384xbf16, #tpu.memory_space<vmem>>, vector<3x128x384xbf16>
    %c0_19 = arith.constant 0 : index
    %c0_20 = arith.constant 0 : index
    %c0_21 = arith.constant 0 : index
    %29 = vector.load %arg10[%c0_19, %c0_20, %c0_21] : memref<10x16x128xbf16, #tpu.memory_space<vmem>>, vector<8x16x128xbf16>
    %30 = vector.shape_cast %29 : vector<8x16x128xbf16> to vector<128x128xbf16>
    %31 = vector.extract_strided_slice %28 {offsets = [0, 0, 0], sizes = [1, 128, 384], strides = [1, 1, 1]} : vector<3x128x384xbf16> to vector<1x128x384xbf16>
    %32 = vector.shape_cast %31 : vector<1x128x384xbf16> to vector<128x384xbf16>
    %cst_22 = arith.constant dense<0.000000e+00> : vector<128x384xf32>
    %33 = tpu.matmul %30, %32, %cst_22 {dimension_numbers = #tpu.dot_dimension_numbers<[1], [0], [0], [1], [0, 0, 1, 1], [], []>} : vector<128x128xbf16>, vector<128x384xbf16>, vector<128x384xf32> -> vector<128x384xf32>
    %c1_23 = arith.constant 1 : index
    %c0_24 = arith.constant 0 : index
    %c0_25 = arith.constant 0 : index
    %34 = vector.load %arg10[%c1_23, %c0_24, %c0_25] : memref<10x16x128xbf16, #tpu.memory_space<vmem>>, vector<8x16x128xbf16>
    %35 = vector.shape_cast %34 : vector<8x16x128xbf16> to vector<128x128xbf16>
    %36 = vector.extract_strided_slice %28 {offsets = [1, 0, 0], sizes = [1, 128, 384], strides = [1, 1, 1]} : vector<3x128x384xbf16> to vector<1x128x384xbf16>
    %37 = vector.shape_cast %36 : vector<1x128x384xbf16> to vector<128x384xbf16>
    %cst_26 = arith.constant dense<0.000000e+00> : vector<128x384xf32>
    %38 = tpu.matmul %35, %37, %cst_26 {dimension_numbers = #tpu.dot_dimension_numbers<[1], [0], [0], [1], [0, 0, 1, 1], [], []>} : vector<128x128xbf16>, vector<128x384xbf16>, vector<128x384xf32> -> vector<128x384xf32>
    %39 = arith.addf %33, %38 : vector<128x384xf32>
    %c2 = arith.constant 2 : index
    %c0_27 = arith.constant 0 : index
    %c0_28 = arith.constant 0 : index
    %40 = vector.load %arg10[%c2, %c0_27, %c0_28] : memref<10x16x128xbf16, #tpu.memory_space<vmem>>, vector<8x16x128xbf16>
    %41 = vector.shape_cast %40 : vector<8x16x128xbf16> to vector<128x128xbf16>
    %42 = vector.extract_strided_slice %28 {offsets = [2, 0, 0], sizes = [1, 128, 384], strides = [1, 1, 1]} : vector<3x128x384xbf16> to vector<1x128x384xbf16>
    %43 = vector.shape_cast %42 : vector<1x128x384xbf16> to vector<128x384xbf16>
    %cst_29 = arith.constant dense<0.000000e+00> : vector<128x384xf32>
    %44 = tpu.matmul %41, %43, %cst_29 {dimension_numbers = #tpu.dot_dimension_numbers<[1], [0], [0], [1], [0, 0, 1, 1], [], []>} : vector<128x128xbf16>, vector<128x384xbf16>, vector<128x384xf32> -> vector<128x384xf32>
    %45 = arith.addf %39, %44 : vector<128x384xf32>
    %46 = vector.shape_cast %45 : vector<128x384xf32> to vector<8x16x384xf32>
    %47 = vector.extract_strided_slice %46 {offsets = [0, 0, 0], sizes = [8, 16, 128], strides = [1, 1, 1]} : vector<8x16x384xf32> to vector<8x16x128xf32>
    %48 = vector.extract_strided_slice %46 {offsets = [0, 0, 128], sizes = [8, 16, 128], strides = [1, 1, 1]} : vector<8x16x384xf32> to vector<8x16x128xf32>
    %49 = vector.extract_strided_slice %46 {offsets = [0, 0, 256], sizes = [8, 16, 128], strides = [1, 1, 1]} : vector<8x16x384xf32> to vector<8x16x128xf32>
    %50 = tpu.iota {dimensions = array<i32: 1>} : vector<8x16x1xi32>
    %c0_i32_30 = arith.constant 0 : i32
    %51 = vector.broadcast %c0_i32_30 : i32 to vector<8x16x1xi32>
    %52 = arith.cmpi eq, %50, %51 : vector<8x16x1xi32>
    %c1_i32_31 = arith.constant 1 : i32
    %53 = tpu.dynamic_rotate %47 by %c1_i32_31 dim 1 : vector<8x16x128xf32>, i32 -> vector<8x16x128xf32>
    %cst_32 = arith.constant 0.000000e+00 : f32
    %54 = vector.shape_cast %52 : vector<8x16x1xi1> to vector<8x16x1xi1>
    %55 = vector.broadcast %54 : vector<8x16x1xi1> to vector<8x16x128xi1>
    %56 = vector.broadcast %cst_32 : f32 to vector<8x16x128xf32>
    %57 = arith.select %55, %56, %53 : vector<8x16x128xi1>, vector<8x16x128xf32>
    %58 = arith.addf %48, %57 : vector<8x16x128xf32>
    %c15_i32 = arith.constant 15 : i32
    %59 = vector.broadcast %c15_i32 : i32 to vector<8x16x1xi32>
    %60 = arith.cmpi eq, %50, %59 : vector<8x16x1xi32>
    %c15_i32_33 = arith.constant 15 : i32
    %61 = tpu.dynamic_rotate %49 by %c15_i32_33 dim 1 : vector<8x16x128xf32>, i32 -> vector<8x16x128xf32>
    %cst_34 = arith.constant 0.000000e+00 : f32
    %62 = vector.shape_cast %60 : vector<8x16x1xi1> to vector<8x16x1xi1>
    %63 = vector.broadcast %62 : vector<8x16x1xi1> to vector<8x16x128xi1>
    %64 = vector.broadcast %cst_34 : f32 to vector<8x16x128xf32>
    %65 = arith.select %63, %64, %61 : vector<8x16x128xi1>, vector<8x16x128xf32>
    %66 = arith.addf %58, %65 : vector<8x16x128xf32>
    %67 = vector.shape_cast %66 : vector<8x16x128xf32> to vector<128x128xf32>
    %c0_35 = arith.constant 0 : index
    %c0_36 = arith.constant 0 : index
    %68 = vector.load %arg6[%c0_35, %c0_36] : memref<1x128xf32, #tpu.memory_space<vmem>>, vector<1x128xf32>
    %69 = vector.broadcast %68 : vector<1x128xf32> to vector<128x128xf32>
    %70 = arith.addf %67, %69 : vector<128x128xf32>
    %cst_37 = arith.constant 0.000000e+00 : f32
    %71 = vector.broadcast %cst_37 : f32 to vector<128x128xf32>
    %72 = arith.maximumf %70, %71 : vector<128x128xf32>
    %73 = arith.truncf %72 : vector<128x128xf32> to vector<128x128xbf16>
    %c0_38 = arith.constant 0 : index
    %c0_39 = arith.constant 0 : index
    %74 = vector.load %arg7[%c0_38, %c0_39] : memref<128x16xbf16, #tpu.memory_space<vmem>>, vector<128x16xbf16>
    %cst_40 = arith.constant dense<0.000000e+00> : vector<128x16xf32>
    %75 = tpu.matmul %73, %74, %cst_40 {dimension_numbers = #tpu.dot_dimension_numbers<[1], [0], [0], [1], [0, 0, 1, 1], [], []>} : vector<128x128xbf16>, vector<128x16xbf16>, vector<128x16xf32> -> vector<128x16xf32>
    %c0_41 = arith.constant 0 : index
    %c0_42 = arith.constant 0 : index
    %76 = vector.load %arg8[%c0_41, %c0_42] : memref<1x16xf32, #tpu.memory_space<vmem>>, vector<1x16xf32>
    %77 = vector.broadcast %76 : vector<1x16xf32> to vector<128x16xf32>
    %78 = arith.addf %75, %77 : vector<128x16xf32>
    %79 = arith.extf %5 : vector<8x16x16xbf16> to vector<8x16x16xf32>
    %80 = vector.shape_cast %78 : vector<128x16xf32> to vector<8x16x16xf32>
    %81 = arith.addf %80, %79 : vector<8x16x16xf32>
    %cst_43 = arith.constant 0.000000e+00 : f32
    %82 = vector.broadcast %cst_43 : f32 to vector<8x16x16xf32>
    %83 = arith.maximumf %81, %82 : vector<8x16x16xf32>
    %84 = arith.truncf %83 : vector<8x16x16xf32> to vector<8x16x16xbf16>
    %c0_44 = arith.constant 0 : index
    %c0_45 = arith.constant 0 : index
    %c0_46 = arith.constant 0 : index
    %c0_47 = arith.constant 0 : index
    %85 = vector.load %arg9[%c0_44, %c0_45, %c0_46, %c0_47] : memref<1x8x16x16xbf16, #tpu.memory_space<vmem>>, vector<1x8x16x16xbf16>
    %86 = vector.shape_cast %85 : vector<1x8x16x16xbf16> to vector<8x16x16xbf16>
    %87 = vector.shape_cast %84 : vector<8x16x16xbf16> to vector<1x8x16x16xbf16>
    tpu.vector_store %arg9[%c0_44, %c0_45, %c0_46, %c0_47], %87 {strides = array<i32>} : memref<1x8x16x16xbf16, #tpu.memory_space<vmem>>, vector<1x8x16x16xbf16>,
    return
  }
  func.func @transform_0(%arg0: i32, %arg1: i32) -> (i32, i32, i32, i32) {
    %c0_i32 = arith.constant 0 : i32
    %c0_i32_0 = arith.constant 0 : i32
    %c0_i32_1 = arith.constant 0 : i32
    %c0_i32_2 = arith.constant 0 : i32
    return %arg0, %c0_i32, %c0_i32_0, %c0_i32_1 : i32, i32, i32, i32
  }
  func.func @transform_1(%arg0: i32, %arg1: i32) -> (i32, i32) {
    %c0_i32 = arith.constant 0 : i32
    %c0_i32_0 = arith.constant 0 : i32
    %c0_i32_1 = arith.constant 0 : i32
    return %c0_i32, %c0_i32_0 : i32, i32
  }
  func.func @transform_2(%arg0: i32, %arg1: i32) -> (i32, i32) {
    %c0_i32 = arith.constant 0 : i32
    %c0_i32_0 = arith.constant 0 : i32
    %c0_i32_1 = arith.constant 0 : i32
    return %c0_i32, %c0_i32_0 : i32, i32
  }
  func.func @transform_3(%arg0: i32, %arg1: i32) -> (i32, i32, i32) {
    %c0_i32 = arith.constant 0 : i32
    %c0_i32_0 = arith.constant 0 : i32
    %c0_i32_1 = arith.constant 0 : i32
    %c0_i32_2 = arith.constant 0 : i32
    return %c0_i32, %c0_i32_0, %c0_i32_1 : i32, i32, i32
  }
  func.func @transform_4(%arg0: i32, %arg1: i32) -> (i32, i32) {
    %c0_i32 = arith.constant 0 : i32
    %c0_i32_0 = arith.constant 0 : i32
    %c0_i32_1 = arith.constant 0 : i32
    return %c0_i32, %c0_i32_0 : i32, i32
  }
  func.func @transform_5(%arg0: i32, %arg1: i32) -> (i32, i32) {
    %c0_i32 = arith.constant 0 : i32
    %c0_i32_0 = arith.constant 0 : i32
    %c0_i32_1 = arith.constant 0 : i32
    return %c0_i32, %c0_i32_0 : i32, i32
  }
  func.func @transform_6(%arg0: i32, %arg1: i32) -> (i32, i32) {
    %c0_i32 = arith.constant 0 : i32
    %c0_i32_0 = arith.constant 0 : i32
    %c0_i32_1 = arith.constant 0 : i32
    return %c0_i32, %c0_i32_0 : i32, i32
  }
  func.func @transform_7(%arg0: i32, %arg1: i32) -> (i32, i32, i32, i32) {
    %c0_i32 = arith.constant 0 : i32
    %c0_i32_0 = arith.constant 0 : i32
    %c0_i32_1 = arith.constant 0 : i32
    return %arg0, %arg1, %c0_i32, %c0_i32_0 : i32, i32, i32, i32
  }
}

</mosaic_0001>

<bundles_post_ra>
// kernel: tpu_custom_call.1
= control target key start
LH: loop header
LB: loop body
LE: loop exit
PB: predicated region body
PF: predicated region fallthrough
CT: control target
= control target key end

     0   :  { %s4253_s0 = inlined_call_operand.hbm [shape: bf16[2,16,16,16], index: 0, kind: input, shape index: {}]   ;;  %s4254_s1 = inlined_call_operand.vmem [shape: bf16[16,128], index: 1, kind: input, shape index: {}]   ;;  %s4255_s2 = inlined_call_operand.vmem [shape: f32[1,128], index: 2, kind: input, shape index: {}]   ;;  %s4256_s3 = inlined_call_operand.hbm [shape: bf16[3,128,384], index: 3, kind: input, shape index: {}]   ;;  %s4257_s4 = inlined_call_operand.vmem [shape: f32[1,128], index: 4, kind: input, shape index: {}]   ;;  %s4258_s5 = inlined_call_operand.vmem [shape: bf16[128,16], index: 5, kind: input, shape index: {}]   ;;  %s4259_s6 = inlined_call_operand.vmem [shape: f32[1,16], index: 6, kind: input, shape index: {}]   ;;  %s4260_s7 = inlined_call_operand.hbm [shape: bf16[2,16,16,16], index: 7, kind: output, shape index: {}]  }
   0x1   :  { %4274 = sst [smem:[#allocation19_spill]] %s4256_s3 }
   0x2   :  { %4275 = sst [smem:[#allocation20_spill]] %s4259_s6 }
   0x3   :  { %4276 = sst [smem:[#allocation21_spill]] %s4260_s7 }
   0x4   :  { %12 = vsyncpa [#allocation4], 0 }
   0x5   :  { %14 = vsyncpa [#allocation4 + $0x1], 0 }
   0x6   :  { %15 = vsyncpa [#allocation7], 0 }
   0x7   :  { %16 = vsyncpa [#allocation5], 0 }
   0x8   :  { %18 = vsyncpa [#allocation5 + $0x1], 0  ;;  %s3505_s24 = smov 0   ;;  %s3507_s25 = smov 0  }
   0x9   :  { %s3509_s26 = smov 0   ;;  %s3511_s27 = smov 0  }
   0xa   :  { %s3513_s28 = smov 0   ;;  %s3515_s29 = smov 0  }
   0xb   :  { %s3517_s30 = smov 0   ;;  %s3519_s8 = smov 0  }
   0xc   :  { %s3521_s9 = smov 0   ;;  %s3523_s10 = smov 0  }
   0xd   :  { %s3525_s11 = smov 0  }
   0xe LB: > { %4277 = sst [smem:[#allocation12_spill]] %s3407_s24  ;;  %s2490_s12 = sadd.s32 4294967295, %s3447_s11   ;;  %s3447_s11 = sphi %s3525_s11, %s24_s11   ;;  %s3443_s10 = sphi %s3523_s10, %s4316_s10   ;;  %s3439_s9 = sphi %s3521_s9, %s4315_s9   ;;  %s3435_s8 = sphi %s3519_s8, %s4314_s8   ;;  %s3431_s30 = sphi %s3517_s30, %s4305_s30   ;;  %s3427_s29 = sphi %s3515_s29, %s4313_s29   ;;  %s3423_s28 = sphi %s3513_s28, %s4312_s28   ;;  %s3419_s27 = sphi %s3511_s27, %s4311_s27   ;;  %s3415_s26 = sphi %s3509_s26, %s4310_s26   ;;  %s3411_s25 = sphi %s3507_s25, %s4309_s25   ;;  %s3407_s24 = sphi %s3505_s24, %s4308_s24  }
   0xf   : > { %4278 = sst [smem:[#allocation13_spill]] %s3435_s8  ;;  %s2491_s13 = sadd.s32 4294967294, %s3447_s11  }
  0x10   : > { %4279 = sst [smem:[#allocation14_spill]] %s3439_s9  ;;  %p56_p0 = scmp.ne.s32.totalorder %s3423_s28, %s3419_s27 }
  0x11   : > { %p3561_p1 = scmp.eq.s32.totalorder %s2490_s12, 0  ;;  %p207_p2 = scmp.ne.s32.totalorder %s3415_s26, %s3411_s25 }
  0x12   : > { %p208_p4 = scmp.eq.s32.totalorder %s2490_s12, 3  ;;  %p213_p5 = scmp.ne.s32.totalorder %s3411_s25, %s3407_s24 }
  0x13   : > { %s4280_s14 = scalar_select %p3561_p1, 1, 0 }
  0x14   : > { %p3570_p3 = por %p3561_p1, %p56_p0  ;;  %p214_p6 = scmp.eq.s32.totalorder %s2491_s13, 3 }
  0x15   : > { %p3576_p7 = por %p208_p4, %p207_p2  ;;  %p2492_p8 = scmp.ge.s32.totalorder %s3447_s11, 1 }
  0x16   : > { %s4281_s16 = scalar_select %p3570_p3, 1, 0 }
  0x17   : > { %s4282_s17 = scalar_select %p3576_p7, 1, 0 }
  0x18   : > { %p3581_p9 = por %p214_p6, %p213_p5  ;;  %p221_p10 = scmp.lt.s32.totalorder %s3447_s11, 5 }
  0x19   : > { %4283 = sst [smem:[#allocation15_spill]] %s4282_s17  ;;  %s3449_s20 = smov [#allocation6]  }
  0x1a   : > { %s4284_s18 = scalar_select %p3581_p9, 1, 0 }
  0x1b   : > { %p3586_p11 = pnand %p2492_p8, %p221_p10  ;;  %s239_s21 = sshll.u32 %s3449_s20, 4  ;;  %s240_s21 = int_to_ptr.vmem [resolvable:$true] %s239_s21 }
  0x1c   : > { %4285 = sst [smem:[#allocation16_spill]] %s4284_s18  ;;  %s4288_s3 = sld [smem:[#allocation19_spill]] }
  0x1d   : > { %s4286_s19 = scalar_select %p3586_p11, 1, 0 }
  0x1e   : > { %p3022_p12 = pneg %p3586_p11 }
  0x20   : > { %p3594_p13 = pnand %p3022_p12, %p3561_p1 }
  0x22   : > { %s3263_s12 = scalar_lea.hbm %s4288_s3, 9216  ;;  %p3265_p2 = pneg %p3594_p13 }
  0x23   : > { %p3264_p0 = scmp.ne.s32.totalorder %s4288_s3, %s3263_s12  ;;  %p3270_p6 = scmp.lt.u32.totalorder %s3263_s12, %s4288_s3 }
  0x25   : > { %p3266_p4 = pnand %p3265_p2, %p3264_p0 }
  0x27   : > { %p3267_p5 = pneg %p3266_p4 }
  0x29   : > { %p3272_p8 = pnand %p3270_p6, %p3267_p5 }
  0x2b   : > { %3275 = shalt.err (!%p3272_p8)
}
  0x2c   : > { %s3276_s24 = scalar_lea.vmem %s240_s21, 9216  ;;  %p3284_p7 = scmp.lt.s32.totalorder %s240_s21, %s240_s21 }
  0x2d   : > { %p3277_p10 = scmp.ne.s32.totalorder %s240_s21, %s3276_s24  ;;  %p3285_p1 = scmp.lt.s32.totalorder %s3276_s24, %s3276_s24 }
  0x2f   : > { %p3279_p12 = pnand %p3277_p10, %p3265_p2  ;;  %p3286_p3 = por %p3285_p1, %p3284_p7 }
  0x31   : > { %p3280_p9 = pneg %p3279_p12 }
  0x33   : > { %p3287_p11 = pnand %p3286_p3, %p3280_p9 }
  0x35   : > { %3290 = shalt.err (!%p3287_p11)
}
  0x36   : > { %s3450_s15 = smov 192   ;;  %s3451_s18 = smov 12  }
  0x37   : > { %3025 = dma.hbm_to_vmem [thread:$0]  (!%p3594_p13), %s4288_s3, 9216, %s240_s21, [#allocation7], %s3450_s15, %s3450_s15, %s3451_s18  }
  0x38   : > { %s33_s24 = sadd.s32 1, %s3439_s9  ;;  %s36_s12 = sadd.s32 1, %s3443_s10 }
  0x39   : > { %p34_p1 = scmp.ge.s32.totalorder %s33_s24, 2  ;;  %s43_s13 = sadd.s32 1, %s3427_s29 }
  0x3a   : > { %p50_p3 = scmp.ne.s32.totalorder %s3427_s29, %s3423_s28  ;;  %p51_p7 = scmp.eq.s32.totalorder %s3447_s11, 0 }
  0x3b   : > { %s4318_s24 = smov (%p34_p1, %s33_s24), 0  ;;  %s4320_s12 = smov (!%p34_p1, %s36_s12), %s3443_s10 }
  0x3c   : > { %4289 = sst [smem:[#allocation17_spill]] %s4318_s24  ;;  %s193_s22 = ssub.s32 %s3439_s9, %s4318_s24 }
  0x3d   : > { %p38_p9 = scmp.ge.s32.totalorder %s4320_s12, 2  ;;  %p3035_p11 = scmp.lt.s32.totalorder %s3447_s11, 4 }
  0x3e   : > { %p3626_p13 = por %p51_p7, %p50_p3  ;;  %s262_s20 = sand.u32 1, %s3427_s29  }
  0x3f   : > { %s4322_s12 = smov (%p38_p9, %s4320_s12), 0  ;;  %s2495_s15 = sshll.u32 %s262_s20, 7 }
  0x40   : > { %4291 = sst [smem:[#allocation18_spill]] %s4322_s12  ;;  %s40_s18 = ssub.s32 %s3443_s10, %s4322_s12 }
  0x41   : > { %p41_p0 = scmp.eq.s32.totalorder %s40_s18, 0  ;;  %s194_s23 = sor.u32 %s193_s22, %s40_s18 }
  0x42   : > { %p195_p2 = scmp.eq.s32.totalorder %s194_s23, 0  ;;  %s2643_s27 = sshll.u32 %s3443_s10, 11 }
  0x43   : > { %s3637_s3 = scalar_select %p41_p0, %s3427_s29, %s43_s13  }
  0x44   : > { %s4292_s24 = sadd.s32 1, %s3415_s26  ;;  %s3647_s8 = scalar_lea.hbm %s4253_s0, %s2643_s27 }
  0x45   : > { %s3642_s9 = scalar_select %p195_p2, %s3415_s26, %s4292_s24  }
  0x46   : > { %s266_s6 = scalar_lea.vmem [#allocation3], %s2495_s15  ;;  %p3655_p4 = pnand %p3035_p11, %p3626_p13 }
  0x47   : > { %s273_s12 = sshll.u32 %s266_s6, 4  ;;  %s3659_s24 = scalar_lea.sflag [#allocation4], %s262_s20  ;;  %s3649_s12 = int_to_ptr.vmem [resolvable:$true] %s273_s12 }
  0x48   : > { %s3291_s7 = scalar_lea.hbm %s3647_s8, 2048  ;;  %p3293_p6 = pneg %p3655_p4 }
  0x49   : > { %p3292_p5 = scmp.ne.s32.totalorder %s3647_s8, %s3291_s7  ;;  %s3296_s22 = scalar_lea.hbm %s4253_s0, 4096 }
  0x4a   : > { %p3297_p12 = scmp.lt.u32.totalorder %s3647_s8, %s4253_s0  ;;  %p3298_p1 = scmp.lt.u32.totalorder %s3296_s22, %s3291_s7 }
  0x4b   : > { %p3294_p8 = pnand %p3293_p6, %p3292_p5  ;;  %p3300_p7 = scmp.lt.u32.totalorder %s3291_s7, %s3647_s8 }
  0x4c   : > { %p3299_p3 = por %p3298_p1, %p3297_p12 }
  0x4d   : > { %p3295_p10 = pneg %p3294_p8 }
  0x4e   : > { %p3301_p9 = por %p3300_p7, %p3299_p3 }
  0x50   : > { %p3302_p11 = pnand %p3301_p9, %p3295_p10 }
  0x52   : > { %3305 = shalt.err (!%p3302_p11)
}
  0x53   : > { %s3306_s20 = scalar_lea.vmem %s3649_s12, 2048  ;;  %s3452_s18 = smov [#allocation3]  }
  0x54   : > { %p3307_p13 = scmp.ne.s32.totalorder %s3649_s12, %s3306_s20  ;;  %s3311_s23 = sshll.u32 %s3452_s18, 4  ;;  %s3312_s23 = int_to_ptr.vmem [resolvable:$false] %s3311_s23 }
  0x55   : > { %s3313_s27 = scalar_lea.vmem %s3312_s23, 4096  ;;  %p3314_p5 = scmp.lt.s32.totalorder %s3649_s12, %s3312_s23 }
  0x56   : > { %p3309_p0 = pnand %p3307_p13, %p3293_p6  ;;  %p3315_p8 = scmp.lt.s32.totalorder %s3313_s27, %s3306_s20 }
  0x58   : > { %p3310_p2 = pneg %p3309_p0  ;;  %p3316_p12 = por %p3315_p8, %p3314_p5 }
  0x5a   : > { %p3317_p1 = pnand %p3316_p12, %p3310_p2 }
  0x5c   : > { %3320 = shalt.err (!%p3317_p1)
}
  0x5d   : > { %s3453_s7 = smov 64   ;;  %s3454_s6 = smov 4  }
  0x5e   : > { %3029 = dma.hbm_to_vmem [thread:$0]  (!%p3655_p4), %s3647_s8, 2048, %s3649_s12, %s3659_s24, %s3453_s7, %s3453_s7, %s3454_s6  }
  0x5f   : > { %p4294_p6 = scmp.ne.s32.totalorder %s4286_s19, 0 }
  0x60   : > { %s287_s17 = sand.u32 (!%p4294_p6), 1, %s3423_s28   ;;  %p4295_p10 = scmp.ne.s32.totalorder (!%p4294_p6), %s4281_s16, 0 }
  0x61   : > { %285 = sbr.rel (%p4294_p6) target bundleno = 1452 (0x5ac), region = 48  ;;  %s3690_s22 = sshll.u32 (!%p4294_p6), %s287_s17, 7 }
  0x62   : > { %s288_s21 = scalar_lea.sflag (!%p4294_p6), [#allocation4], %s287_s17  ;;  %s291_s15 = scalar_lea.vmem (!%p4294_p6), [#allocation3], %s3690_s22 }
  0x68   : > { %3394 = dma.done.wait (%p4295_p10), %s288_s21, 2048  }
  0x69   : > { %3396 = vsyncadd (%p4295_p10), %s288_s21, 4294965248  ;;  %p4296_p3 = scmp.ne.s32.totalorder %s4280_s14, 0 }
  0x6b   : > { %3398 = dma.done.wait (%p4296_p3), [#allocation7], 9216  }
  0x6c   : > { %3400 = vsyncadd (%p4296_p3), [#allocation7], 4294958080  ;;  %s323_s8 = sand.u32 1, %s3411_s25   ;;  %s2502_s19 = sshll.u32 %s3431_s30, 3  ;;  %v3715_v0 = vld [vmem:[%s4254_s1] sm:$0xff]   ;;  %vm403_vm0 = vcmask 130048  }
  0x6d   : > { %s3705_s12 = sshll.u32 %s323_s8, 6  ;;  %s2645_s13 = sshll.u32 %s3431_s30, 6  ;;  %2742 = vmatprep.subr.bf16.mxu0 %v3715_v0  ;;  %2900 = vmatprep.subr.bf16.mxu1 %v3715_v0  ;;  %v3764_v9 = vld [vmem:[%s4255_s2] ss:$0 sm:$0xff] }
  0x6e   : > { %s3710_s16 = scalar_lea.vmem %s291_s15, %s2645_s13 [#allocation3]  ;;  %2743 = vmatpush3.bf16.msra.mxu0 %v3715_v0  ;;  %2901 = vmatpush3.bf16.msra.mxu1 %v3715_v0  ;;  %s3783_s23 = scalar_lea.vmem [#allocation8], %s3705_s12 }
  0x6f   : > { %v3718_v1 = vld [vmem:[%s3710_s16] sm:$0xff]   ;;  %v3724_v3 = vld [vmem:[%s3710_s16 + $0x8] sm:$0xff]   ;;  %v3732_v5 = vld [vmem:[%s3710_s16 + $0x10] sm:$0xff]   ;;  %p2523_p4 = scmp.le.s32.totalorder %s3431_s30, 0 }
  0x70   : > { %v3721_v2 = vld [vmem:[%s3710_s16 + $0x20] sm:$0xff]   ;;  %v3729_v4 = vld [vmem:[%s3710_s16 + $0x28] sm:$0xff]   ;;  %v3735_v6 = vld [vmem:[%s3710_s16 + $0x30] sm:$0xff]   ;;  %2744 = vmatprep.mubr.msk.bf16.mxu0 %vm403_vm0, %v3718_v1  ;;  %s2524_s27 = sadd.s32 (!%p2523_p4), 4294967295, %s2502_s19  ;;  %vm3456_vm1 = vmmov (!%p2523_p4), 0  }
  0x71   : > { %2752 = vmatprep.mubr.msk.bf16.mxu1 %vm403_vm0, %v3721_v2  ;;  %2745 = vmatmul.mubr.msk.bf16.vlgmr.msra.gmra.mrb[0].mxu0 %vm403_vm0, %v3724_v3  ;;  %v3752_v7 = vld [vmem:[%s3710_s16 + $0x18] sm:$0xff]   ;;  %s2646_s7 = sshll.u32 (!%p2523_p4), %s2524_s27, 3 }
  0x72   : > { %2753 = vmatmul.mubr.msk.bf16.vlgmr.msra.gmra.mrb[0].mxu1 %vm403_vm0, %v3729_v4  ;;  %2748 = vmatprep.mubr.msk.bf16.mxu0 %vm403_vm0, %v3732_v5  ;;  %v3755_v8 = vld [vmem:[%s3710_s16 + $0x38] sm:$0xff]   ;;  %s565_s6 = scalar_lea.vmem (!%p2523_p4), %s291_s15, %s2646_s7 [#allocation3] }
  0x73   : > { %2756 = vmatprep.mubr.msk.bf16.mxu1 %vm403_vm0, %v3735_v6 }
  0x79   : > { %2749 = vmatmul.mubr.msk.bf16.gmra.mrb[4].mxu0 %vm403_vm0, %v3752_v7 }
  0x7a   : > { %2757 = vmatmul.mubr.msk.bf16.gmra.mrb[4].mxu1 %vm403_vm0, %v3755_v8 }
 0x144   : > { %v2746_v10 = vpop.f32.mrb[0].mxu0 }
 0x145   : > { %v2754_v11 = vpop.f32.mrb[0].mxu1  ;;  %v471_v12 = vadd.f32 %v2746_v10, %v3764_v9  ;;  %v462_v14 = vpop.f32.mrb[1].mxu0 }
 0x146   : > { %v503_v13 = vadd.f32 %v2754_v11, %v3764_v9  ;;  %v494_v15 = vpop.f32.mrb[1].mxu1  ;;  %v463_v16 = vadd.f32 %v3764_v9, %v462_v14  ;;  %v2747_v18 = vpop.f32.mrb[2].mxu0 }
 0x147   : > { %v495_v17 = vadd.f32 %v3764_v9, %v494_v15  ;;  %v2755_v19 = vpop.f32.mrb[2].mxu1  ;;  %v474_v20 = vadd.f32 %v2747_v18, %v3764_v9  ;;  %v465_v22 = vpop.f32.mrb[3].mxu0  ;;  %v527_v26 = vmax.f32 %v471_v12, 0.0  ;;  %v3455_v12 = vmov (!%p2523_p4), 0.0  }
 0x148   : > { %v506_v21 = vadd.f32 %v2755_v19, %v3764_v9  ;;  %v497_v23 = vpop.f32.mrb[3].mxu1  ;;  %v466_v24 = vadd.f32 %v3764_v9, %v465_v22  ;;  %v535_v27 = vmax.f32 %v503_v13, 0.0  ;;  %v525_v30 = vmax.f32 %v463_v16, 0.0  ;;  %2760 = vmatprep.subr.bf16.mxu0 (!%p2523_p4), %v3455_v12  ;;  %2762 = vmatprep.mubr.msk.bf16.mxu0 (!%p2523_p4), %vm3456_vm1, %v3455_v12  ;;  %v3157_v13 = vld [vmem:[%s565_s6] sm:$0xff] (!%p2523_p4)  }
 0x149   : > { %v498_v25 = vadd.f32 %v3764_v9, %v497_v23  ;;  %v528_v28 = vmax.f32 %v474_v20, 0.0  ;;  %v533_v31 = vmax.f32 %v495_v17, 0.0  ;;  %2761 = vmatpush3.bf16.msra.mxu0 (!%p2523_p4), %v3715_v0 }
 0x14a   : > { %v536_v29 = vmax.f32 %v506_v21, 0.0  ;;  %v526_v32 = vmax.f32 %v466_v24, 0.0 }
 0x14b   : > { %v534_v33 = vmax.f32 %v498_v25, 0.0  ;;  %v542_v34 = vpack.c.bf16 %v528_v28, %v527_v26 }
 0x14c   : > { %v546_v35 = vpack.c.bf16 %v536_v29, %v535_v27  ;;  %v541_v36 = vpack.c.bf16 %v526_v32, %v525_v30  ;;  %v2750_v38 = vpop.f32.mrb[4].mxu0  ;;  %2763 = vmatmul.mubr.msk.bf16.vlgmr.msra.gmra.mrb[0].mxu0 (!%p2523_p4), %vm403_vm0, %v3157_v13 }
 0x14d   : > { %v545_v37 = vpack.c.bf16 %v534_v33, %v533_v31  ;;  %v2758_v39 = vpop.f32.mrb[4].mxu1  ;;  %551 = vst [vmem:[#allocation2 + $0x10] sm:$0xff] %v542_v34  ;;  %v487_v40 = vadd.f32 %v2750_v38, %v3764_v9  ;;  %v478_v42 = vpop.f32.mrb[5].mxu0 }
 0x14e   : > { %555 = vst [vmem:[#allocation2 + $0x30] sm:$0xff] %v546_v35  ;;  %v519_v41 = vadd.f32 %v2758_v39, %v3764_v9  ;;  %v510_v43 = vpop.f32.mrb[5].mxu1  ;;  %550 = vst [vmem:[#allocation2 + $0x8] sm:$0xff] %v541_v36  ;;  %v479_v44 = vadd.f32 %v3764_v9, %v478_v42  ;;  %v2751_v46 = vpop.f32.mrb[6].mxu0 }
 0x14f   : > { %554 = vst [vmem:[#allocation2 + $0x28] sm:$0xff] %v545_v37  ;;  %v511_v45 = vadd.f32 %v3764_v9, %v510_v43  ;;  %v2759_v47 = vpop.f32.mrb[6].mxu1  ;;  %v490_v48 = vadd.f32 %v2751_v46, %v3764_v9  ;;  %v481_v50 = vpop.f32.mrb[7].mxu0  ;;  %v531_v54 = vmax.f32 %v487_v40, 0.0 }
 0x150   : > { %v522_v49 = vadd.f32 %v2759_v47, %v3764_v9  ;;  %v513_v51 = vpop.f32.mrb[7].mxu1  ;;  %v482_v52 = vadd.f32 %v3764_v9, %v481_v50  ;;  %v539_v55 = vmax.f32 %v519_v41, 0.0  ;;  %v529_v58 = vmax.f32 %v479_v44, 0.0 }
 0x151   : > { %v514_v53 = vadd.f32 %v3764_v9, %v513_v51  ;;  %v532_v56 = vmax.f32 %v490_v48, 0.0  ;;  %v537_v59 = vmax.f32 %v511_v45, 0.0  ;;  %561 = sbr.rel (%p2523_p4) target bundleno = 553 (0x229), region = 60 }
 0x152   : > { %v540_v57 = vmax.f32 %v522_v49, 0.0  ;;  %v530_v60 = vmax.f32 %v482_v52, 0.0 }
 0x153   : > { %v538_v61 = vmax.f32 %v514_v53, 0.0  ;;  %v544_v62 = vpack.c.bf16 %v532_v56, %v531_v54 }
 0x154   : > { %v548_v63 = vpack.c.bf16 %v540_v57, %v539_v55  ;;  %v543_v10 = vpack.c.bf16 %v530_v60, %v529_v58 }
 0x155   : > { %v547_v11 = vpack.c.bf16 %v538_v61, %v537_v59  ;;  %553 = vst [vmem:[#allocation2 + $0x20] sm:$0xff] %v544_v62 }
 0x156   : > { %557 = vst [vmem:[#allocation2 + $0x40] sm:$0xff] %v548_v63  ;;  %552 = vst [vmem:[#allocation2 + $0x18] sm:$0xff] %v543_v10 }
 0x157   : > { %556 = vst [vmem:[#allocation2 + $0x38] sm:$0xff] %v547_v11 }
 0x21f   : > { %v610_v14 = vpop.f32.mrb[0].mxu0 }
 0x220   : > { %v611_v15 = vadd.f32 %v3764_v9, %v610_v14  ;;  %v2764_v16 = vpop.f32.mrb[1].mxu0 }
 0x221   : > { %v613_v17 = vpop.f32.mrb[2].mxu0 }
 0x222   : > { %v614_v18 = vadd.f32 %v3764_v9, %v613_v17  ;;  %v2765_v19 = vpop.f32.mrb[3].mxu0  ;;  %v617_v20 = vmax.f32 %v611_v15, 0.0 }
 0x224   : > { %v618_v21 = vmax.f32 %v614_v18, 0.0 }
 0x226   : > { %v619_v22 = vpack.c.bf16 %v618_v21, %v617_v20 }
 0x228   : > { %620 = vst [vmem:[#allocation2] sm:$0xff] %v619_v22 }
 0x229 PF: > { %p2529_p7 = scmp.ne.s32.totalorder %s3431_s30, 0 }
 0x22a   : > { %v3457_v23 = vmov (!%p2529_p7), 0  }
 0x22b   : > { %624 = sbr.rel (%p2529_p7) target bundleno = 562 (0x232), region = 64  ;;  %625 = vst [vmem:[#allocation2] sm:$0xff] (!%p2529_p7), %v3457_v23 }
 0x232 PF: > { %p2530_p9 = scmp.ge.s32.totalorder %s3431_s30, 1 }
 0x233   : > { %v3458_v24 = vmov (!%p2530_p9), 0.0   ;;  %vm3459_vm2 = vmmov (!%p2530_p9), 0   ;;  %v3158_v25 = vld [vmem:[%s3710_s16 + $0x40] sm:$0xff] (!%p2530_p9)  }
 0x234   : > { %629 = sbr.rel (%p2530_p9) target bundleno = 789 (0x315), region = 68  ;;  %2766 = vmatprep.subr.bf16.mxu0 (!%p2530_p9), %v3458_v24  ;;  %2768 = vmatprep.mubr.msk.bf16.mxu0 (!%p2530_p9), %vm3459_vm2, %v3458_v24 }
 0x235   : > { %2767 = vmatpush3.bf16.msra.mxu0 (!%p2530_p9), %v3715_v0 }
 0x238   : > { %2769 = vmatmul.mubr.msk.bf16.vlgmr.msra.gmra.mrb[0].mxu0 (!%p2530_p9), %vm403_vm0, %v3158_v25 }
 0x30b   : > { %v678_v26 = vpop.f32.mrb[0].mxu0 }
 0x30c   : > { %v679_v27 = vadd.f32 %v3764_v9, %v678_v26  ;;  %v2770_v28 = vpop.f32.mrb[1].mxu0 }
 0x30d   : > { %v681_v29 = vpop.f32.mrb[2].mxu0 }
 0x30e   : > { %v682_v30 = vadd.f32 %v3764_v9, %v681_v29  ;;  %v2771_v31 = vpop.f32.mrb[3].mxu0  ;;  %v685_v32 = vmax.f32 %v679_v27, 0.0 }
 0x310   : > { %v686_v33 = vmax.f32 %v682_v30, 0.0 }
 0x312   : > { %v687_v34 = vpack.c.bf16 %v686_v33, %v685_v32 }
 0x314   : > { %689 = vst [vmem:[#allocation2 + $0x48] sm:$0xff] %v687_v34 }
 0x315 PF: > { %p2537_p11 = scmp.ne.s32.totalorder %s3431_s30, 1 }
 0x316   : > { %v3460_v35 = vmov (!%p2537_p11), 0  }
 0x317   : > { %693 = sbr.rel (%p2537_p11) target bundleno = 798 (0x31e), region = 72  ;;  %695 = vst [vmem:[#allocation2 + $0x48] sm:$0xff] (!%p2537_p11), %v3460_v35 }
 0x31e PF: > { %v3159_v0 = vld [vmem:[#allocation6 + $0xc4] ss:$12 sps:$4 sm:$0xff]   ;;  %v3161_v36 = vld [vmem:[#allocation6 + $0xc0] ss:$12 sps:$4 sm:$0xff]   ;;  %v3461_v37 = vmov 0   ;;  %v3804_v53 = vld [vmem:[#allocation2 + $0x8] sm:$0xff] }
 0x31f   : > { %968 = vmatprep.mubr.bf16.mxu0 %v3461_v37  ;;  %1008 = vmatprep.mubr.bf16.mxu1 %v3461_v37  ;;  %v3162_v9 = vld [vmem:[#allocation6 + $0xdc] ss:$12 sps:$4 sm:$0xff]   ;;  %v3164_v38 = vld [vmem:[#allocation6 + $0xd8] ss:$12 sps:$4 sm:$0xff]   ;;  %v3165_v39 = vld [vmem:[#allocation6 + $0xf4] ss:$12 sps:$4 sm:$0xff]  }
 0x320   : > { %936 = vmatprep.subr.bf16.mxu0 %v3159_v0  ;;  %2902 = vmatprep.subr.bf16.mxu1 %v3159_v0  ;;  %v3167_v40 = vld [vmem:[#allocation6 + $0xf0] ss:$12 sps:$4 sm:$0xff]   ;;  %v3168_v41 = vld [vmem:[#allocation6 + $0x10c] ss:$12 sps:$4 sm:$0xff]   ;;  %v3170_v42 = vld [vmem:[#allocation6 + $0x108] ss:$12 sps:$4 sm:$0xff]  }
 0x321   : > { %937 = vmatpush1.bf16.msra.mxu0 %v3161_v36  ;;  %2910 = vmatpush1.bf16.msra.mxu1 %v3161_v36  ;;  %v3171_v43 = vld [vmem:[#allocation6 + $0x124] ss:$12 sps:$4 sm:$0xff]   ;;  %v3173_v44 = vld [vmem:[#allocation6 + $0x120] ss:$12 sps:$4 sm:$0xff]   ;;  %v3174_v45 = vld [vmem:[#allocation6 + $0x13c] ss:$12 sps:$4 sm:$0xff]  }
 0x322   : > { %938 = vmatprep.subr.bf16.mxu0 %v3162_v9  ;;  %2903 = vmatprep.subr.bf16.mxu1 %v3162_v9  ;;  %v3176_v46 = vld [vmem:[#allocation6 + $0x138] ss:$12 sps:$4 sm:$0xff]   ;;  %v3177_v47 = vld [vmem:[#allocation6 + $0x154] ss:$12 sps:$4 sm:$0xff]   ;;  %v3179_v48 = vld [vmem:[#allocation6 + $0x150] ss:$12 sps:$4 sm:$0xff]  }
 0x323   : > { %v3180_v49 = vld [vmem:[#allocation6 + $0x16c] ss:$12 sps:$4 sm:$0xff]   ;;  %v3182_v50 = vld [vmem:[#allocation6 + $0x168] ss:$12 sps:$4 sm:$0xff]   ;;  %v3186_v52 = vld [vmem:[#allocation6 + $0x4] ss:$12 sps:$4 sm:$0xff]  }
 0x324   : > { %v3183_v51 = vld [vmem:[#allocation6 + $0xc8] ss:$12 sps:$4 sm:$0xff]   ;;  %v3806_v54 = vld [vmem:[#allocation2 + $0x28] sm:$0xff]  ;;  %v3184_v55 = vld [vmem:[#allocation6] ss:$12 sps:$4 sm:$0xff]   ;;  %s4297_s12 = sld [smem:[#allocation20_spill]] }
 0x325   : > { %939 = vmatpush1.bf16.msra.mxu0 %v3164_v38  ;;  %2911 = vmatpush1.bf16.msra.mxu1 %v3164_v38  ;;  %v3187_v56 = vld [vmem:[#allocation6 + $0xe0] ss:$12 sps:$4 sm:$0xff]   ;;  %v3190_v57 = vld [vmem:[#allocation6 + $0x1c] ss:$12 sps:$4 sm:$0xff]   ;;  %v3188_v58 = vld [vmem:[#allocation6 + $0x18] ss:$12 sps:$4 sm:$0xff]  }
 0x326   : > { %940 = vmatprep.subr.bf16.mxu0 %v3165_v39  ;;  %2904 = vmatprep.subr.bf16.mxu1 %v3165_v39  ;;  %v3191_v59 = vld [vmem:[#allocation6 + $0xf8] ss:$12 sps:$4 sm:$0xff]   ;;  %v3194_v60 = vld [vmem:[#allocation6 + $0x34] ss:$12 sps:$4 sm:$0xff]   ;;  %v3192_v63 = vld [vmem:[#allocation6 + $0x30] ss:$12 sps:$4 sm:$0xff]  }
 0x327   : > { %v3812_v61 = vld [vmem:[#allocation2 + $0x10] sm:$0xff]  ;;  %v3195_v10 = vld [vmem:[#allocation6 + $0x110] ss:$12 sps:$4 sm:$0xff]   ;;  %v3198_v11 = vld [vmem:[#allocation6 + $0x4c] ss:$12 sps:$4 sm:$0xff]   ;;  %vm2351_vm7 = vcmask 125952  }
 0x328   : > { %v3814_v62 = vld [vmem:[#allocation2 + $0x30] sm:$0xff]  ;;  %v3196_v12 = vld [vmem:[#allocation6 + $0x48] ss:$12 sps:$4 sm:$0xff]   ;;  %v3208_v25 = vld [vmem:[#allocation6 + $0x90] ss:$12 sps:$4 sm:$0xff]   ;;  %s4298_s13 = sld [smem:[#allocation13_spill]] }
 0x329   : > { %941 = vmatpush1.bf16.msra.mxu0 %v3167_v40  ;;  %2912 = vmatpush1.bf16.msra.mxu1 %v3167_v40  ;;  %v3199_v13 = vld [vmem:[#allocation6 + $0x128] ss:$12 sps:$4 sm:$0xff]   ;;  %v3202_v14 = vld [vmem:[#allocation6 + $0x64] ss:$12 sps:$4 sm:$0xff]   ;;  %v3200_v17 = vld [vmem:[#allocation6 + $0x60] ss:$12 sps:$4 sm:$0xff]  }
 0x32a   : > { %942 = vmatprep.subr.bf16.mxu0 %v3168_v41  ;;  %2905 = vmatprep.subr.bf16.mxu1 %v3168_v41  ;;  %v3820_v15 = vld [vmem:[#allocation2 + $0x18] sm:$0xff]  ;;  %v3204_v20 = vld [vmem:[#allocation6 + $0x78] ss:$12 sps:$4 sm:$0xff]   ;;  %v3210_v22 = vld [vmem:[#allocation6 + $0x94] ss:$12 sps:$4 sm:$0xff]   ;;  %s2664_s16 = sshll.u32 %s3431_s30, 4 }
 0x32b   : > { %v3822_v16 = vld [vmem:[#allocation2 + $0x38] sm:$0xff]  ;;  %v3207_v21 = vld [vmem:[#allocation6 + $0x158] ss:$12 sps:$4 sm:$0xff]   ;;  %v3828_v23 = vld [vmem:[#allocation2 + $0x20] sm:$0xff]  ;;  %s2385_s14 = sshll.u32 %s3783_s23, 4  ;;  %s4299_s18 = sld [smem:[#allocation15_spill]]  ;;  %s4182_s14 = int_to_ptr.vmem [resolvable:$true] %s2385_s14 }
 0x32c   : > { %v3203_v18 = vld [vmem:[#allocation6 + $0x140] ss:$12 sps:$4 sm:$0xff]   ;;  %v3206_v19 = vld [vmem:[#allocation6 + $0x7c] ss:$12 sps:$4 sm:$0xff]   ;;  %v3830_v24 = vld [vmem:[#allocation2 + $0x40] sm:$0xff]  ;;  %s4300_s6 = sld [smem:[#allocation21_spill]] }
 0x32d   : > { %943 = vmatpush1.bf16.msra.mxu0 %v3170_v42  ;;  %2913 = vmatpush1.bf16.msra.mxu1 %v3170_v42  ;;  %v3211_v26 = vld [vmem:[#allocation6 + $0x170] ss:$12 sps:$4 sm:$0xff]   ;;  %v3214_v27 = vld [vmem:[#allocation6 + $0xac] ss:$12 sps:$4 sm:$0xff]   ;;  %v3212_v28 = vld [vmem:[#allocation6 + $0xa8] ss:$12 sps:$4 sm:$0xff]  }
 0x32e   : > { %944 = vmatprep.subr.bf16.mxu0 %v3171_v43  ;;  %2906 = vmatprep.subr.bf16.mxu1 %v3171_v43  ;;  %v3215_v29 = vld [vmem:[#allocation6 + $0x8] ss:$12 sps:$4 sm:$0xff]   ;;  %v3218_v30 = vld [vmem:[#allocation6 + $0x184] ss:$12 sps:$4 sm:$0xff]   ;;  %v3216_v32 = vld [vmem:[#allocation6 + $0x180] ss:$12 sps:$4 sm:$0xff]  }
 0x32f   : > { %v792_v31 = vld [vmem:[#allocation2] sm:$0xff]  ;;  %v3219_v33 = vld [vmem:[#allocation6 + $0x20] ss:$12 sps:$4 sm:$0xff]   ;;  %v3223_v34 = vld [vmem:[#allocation6 + $0x19c] ss:$12 sps:$4 sm:$0xff]   ;;  %s2639_s24 = sshll.u32 %s4298_s13, 5 }
 0x330   : > { %v3221_v35 = vld [vmem:[#allocation6 + $0x198] ss:$12 sps:$4 sm:$0xff]   ;;  %v3228_v36 = vld [vmem:[#allocation6 + $0x1b4] ss:$12 sps:$4 sm:$0xff]   ;;  %v3224_v9 = vld [vmem:[#allocation6 + $0x50] ss:$12 sps:$4 sm:$0xff]   ;;  %s2382_s20 = sadd.s32 %s2664_s16, %s2639_s24 }
 0x331   : > { %945 = vmatpush1.bf16.msra.mxu0 %v3173_v44  ;;  %2914 = vmatpush1.bf16.msra.mxu1 %v3173_v44  ;;  %v3220_v0 = vld [vmem:[#allocation6 + $0x38] ss:$12 sps:$4 sm:$0xff]   ;;  %v3226_v38 = vld [vmem:[#allocation6 + $0x1b0] ss:$12 sps:$4 sm:$0xff]   ;;  %v3225_v40 = vld [vmem:[#allocation6 + $0x68] ss:$12 sps:$4 sm:$0xff]  }
 0x332   : > { %946 = vmatprep.subr.bf16.mxu0 %v3174_v45  ;;  %2907 = vmatprep.subr.bf16.mxu1 %v3174_v45  ;;  %v3233_v39 = vld [vmem:[#allocation6 + $0x1cc] ss:$12 sps:$4 sm:$0xff]   ;;  %v3231_v41 = vld [vmem:[#allocation6 + $0x1c8] ss:$12 sps:$4 sm:$0xff]   ;;  %v3237_v43 = vld [vmem:[#allocation6 + $0x1e4] ss:$12 sps:$4 sm:$0xff]  }
 0x333   : > { %v3229_v42 = vld [vmem:[#allocation6 + $0x80] ss:$12 sps:$4 sm:$0xff]   ;;  %v3242_v45 = vld [vmem:[#allocation6 + $0x1fc] ss:$12 sps:$4 sm:$0xff]   ;;  %s2640_s30 = sshll.u32 %s2382_s20, 6  ;;  %s4192_s22 = scalar_lea.sflag [#allocation5], %s323_s8 }
 0x334   : > { %v3235_v44 = vld [vmem:[#allocation6 + $0x1e0] ss:$12 sps:$4 sm:$0xff]   ;;  %s4180_s17 = scalar_lea.hbm %s4300_s6, %s2640_s30  ;;  %s3321_s21 = scalar_lea.vmem %s4182_s14, 1024 }
 0x335   : > { %947 = vmatpush1.bf16.msra.mxu0 %v3176_v46  ;;  %2915 = vmatpush1.bf16.msra.mxu1 %v3176_v46  ;;  %v3230_v46 = vld [vmem:[#allocation6 + $0x98] ss:$12 sps:$4 sm:$0xff]   ;;  %p3322_p13 = scmp.ne.s32.totalorder %s4182_s14, %s3321_s21  ;;  %p4301_p0 = scmp.ne.s32.totalorder %s4299_s18, 0 }
 0x336   : > { %948 = vmatprep.subr.bf16.mxu0 %v3177_v47  ;;  %2908 = vmatprep.subr.bf16.mxu1 %v3177_v47  ;;  %v3234_v47 = vld [vmem:[#allocation6 + $0xb0] ss:$12 sps:$4 sm:$0xff]   ;;  %s3462_s15 = smov [#allocation8]  }
 0x337   : > { %p3323_p2 = pnand %p3322_p13, %p4301_p0  ;;  %s3325_s19 = sshll.u32 %s3462_s15, 4  ;;  %s3326_s19 = int_to_ptr.vmem [resolvable:$false] %s3325_s19 }
 0x338   : > { %p3328_p8 = scmp.lt.s32.totalorder %s4182_s14, %s3326_s19 }
 0x339   : > { %949 = vmatpush1.bf16.msra.mxu0 %v3179_v48  ;;  %2916 = vmatpush1.bf16.msra.mxu1 %v3179_v48  ;;  %v3240_v48 = vld [vmem:[#allocation6 + $0x1f8] ss:$12 sps:$4 sm:$0xff]   ;;  %p3324_p5 = pneg %p3323_p2 }
 0x33a   : > { %950 = vmatprep.subr.bf16.mxu0 %v3180_v49  ;;  %2909 = vmatprep.subr.bf16.mxu1 %v3180_v49  ;;  %v3247_v49 = vld [vmem:[#allocation6 + $0x214] ss:$12 sps:$4 sm:$0xff]  }
 0x33d   : > { %951 = vmatpush1.bf16.msra.mxu0 %v3182_v50  ;;  %2917 = vmatpush1.bf16.msra.mxu1 %v3182_v50  ;;  %v3238_v50 = vld [vmem:[#allocation6 + $0x188] ss:$12 sps:$4 sm:$0xff]  }
 0x33e   : > { %2772 = vmatprep.subr.bf16.mxu1 %v3183_v51  ;;  %1274 = vmatprep.subr.bf16.mxu0 %v3186_v52  ;;  %v3239_v52 = vld [vmem:[#allocation6 + $0x1a0] ss:$12 sps:$4 sm:$0xff]  }
 0x340   : > { %969 = vmatmul.mubr.bf16.vlgmr.msra.gmra.mrb[0].mxu0 %v3804_v53  ;;  %1009 = vmatmul.mubr.bf16.vlgmr.msra.gmra.mrb[0].mxu1 %v3806_v54 }
 0x341   : > { %2773 = vmatpush3.bf16.msra.mxu1 %v3183_v51  ;;  %1275 = vmatpush1.bf16.msra.mxu0 %v3184_v55  ;;  %v3245_v51 = vld [vmem:[#allocation6 + $0x210] ss:$12 sps:$4 sm:$0xff]   ;;  %v3252_v55 = vld [vmem:[#allocation6 + $0x22c] ss:$12 sps:$4 sm:$0xff]  }
 0x342   : > { %2774 = vmatprep.subr.bf16.mxu1 %v3187_v56  ;;  %1276 = vmatprep.subr.bf16.mxu0 %v3190_v57  ;;  %v3243_v57 = vld [vmem:[#allocation6 + $0x1b8] ss:$12 sps:$4 sm:$0xff]  }
 0x343   : > { %978 = vmatprep.mubr.bf16.mxu0 %v3461_v37  ;;  %1018 = vmatprep.mubr.bf16.mxu1 %v3461_v37 }
 0x345   : > { %2775 = vmatpush3.bf16.msra.mxu1 %v3187_v56  ;;  %1277 = vmatpush1.bf16.msra.mxu0 %v3188_v58  ;;  %v3250_v56 = vld [vmem:[#allocation6 + $0x228] ss:$12 sps:$4 sm:$0xff]   ;;  %v3244_v58 = vld [vmem:[#allocation6 + $0x1d0] ss:$12 sps:$4 sm:$0xff]  }
 0x346   : > { %2776 = vmatprep.subr.bf16.mxu1 %v3191_v59  ;;  %1278 = vmatprep.subr.bf16.mxu0 %v3194_v60  ;;  %v3253_v60 = vld [vmem:[#allocation6 + $0x218] ss:$12 sps:$4 sm:$0xff]  }
 0x348   : > { %979 = vmatmul.mubr.bf16.gmra.mrb[4].mxu0 %v3812_v61  ;;  %1019 = vmatmul.mubr.bf16.gmra.mrb[4].mxu1 %v3814_v62 }
 0x349   : > { %2777 = vmatpush3.bf16.msra.mxu1 %v3191_v59  ;;  %1279 = vmatpush1.bf16.msra.mxu0 %v3192_v63  ;;  %v3249_v59 = vld [vmem:[#allocation6 + $0x200] ss:$12 sps:$4 sm:$0xff]   ;;  %v3254_v63 = vld [vmem:[#allocation6 + $0x230] ss:$12 sps:$4 sm:$0xff]  }
 0x34a   : > { %2778 = vmatprep.subr.bf16.mxu1 %v3195_v10  ;;  %1280 = vmatprep.subr.bf16.mxu0 %v3198_v11  ;;  %v1492_v11 = vld [vmem:[#allocation2 + $0x48] sm:$0xff] }
 0x34b   : > { %988 = vmatprep.mubr.bf16.mxu0 %v3461_v37  ;;  %1028 = vmatprep.mubr.bf16.mxu1 %v3461_v37 }
 0x34d   : > { %2779 = vmatpush3.bf16.msra.mxu1 %v3195_v10  ;;  %1281 = vmatpush1.bf16.msra.mxu0 %v3196_v12  ;;  %v3255_v10 = vld [vmem:[%s4258_s5] sm:$0xff]  }
 0x34e   : > { %2780 = vmatprep.subr.bf16.mxu1 %v3199_v13  ;;  %1282 = vmatprep.subr.bf16.mxu0 %v3202_v14  ;;  %v3259_v12 = vld [vmem:[%s4258_s5 + $0x20] sm:$0xff]   ;;  %v3262_v14 = vld [vmem:[%s4258_s5 + $0x38] sm:$0xff]  }
 0x350   : > { %989 = vmatmul.mubr.bf16.gmra.mrb[8].mxu0 %v3820_v15  ;;  %1029 = vmatmul.mubr.bf16.gmra.mrb[8].mxu1 %v3822_v16 }
 0x351   : > { %2781 = vmatpush3.bf16.msra.mxu1 %v3199_v13  ;;  %1283 = vmatpush1.bf16.msra.mxu0 %v3200_v17  ;;  %v3261_v13 = vld [vmem:[%s4258_s5 + $0x30] sm:$0xff]  }
 0x352   : > { %2782 = vmatprep.subr.bf16.mxu1 %v3203_v18  ;;  %1284 = vmatprep.subr.bf16.mxu0 %v3206_v19 }
 0x353   : > { %998 = vmatprep.mubr.bf16.mxu0 %v3461_v37  ;;  %1038 = vmatprep.mubr.bf16.mxu1 %v3461_v37 }
 0x355   : > { %2783 = vmatpush3.bf16.msra.mxu1 %v3203_v18  ;;  %1285 = vmatpush1.bf16.msra.mxu0 %v3204_v20 }
 0x356   : > { %2784 = vmatprep.subr.bf16.mxu1 %v3207_v21  ;;  %1286 = vmatprep.subr.bf16.mxu0 %v3210_v22 }
 0x358   : > { %999 = vmatmul.mubr.bf16.gmra.mrb[12].mxu0 %v3828_v23  ;;  %1039 = vmatmul.mubr.bf16.gmra.mrb[12].mxu1 %v3830_v24 }
 0x359   : > { %2785 = vmatpush3.bf16.msra.mxu1 %v3207_v21  ;;  %1287 = vmatpush1.bf16.msra.mxu0 %v3208_v25 }
 0x35a   : > { %2786 = vmatprep.subr.bf16.mxu1 %v3211_v26  ;;  %1288 = vmatprep.subr.bf16.mxu0 %v3214_v27 }
 0x35b   : > { %2788 = vmatprep.mubr.bf16.mxu1 %v3804_v53  ;;  %1306 = vmatprep.mubr.bf16.mxu0 %v3461_v37 }
 0x35d   : > { %2787 = vmatpush3.bf16.msra.mxu1 %v3211_v26  ;;  %1289 = vmatpush1.bf16.msra.mxu0 %v3212_v28 }
 0x35e   : > { %2804 = vmatprep.subr.bf16.mxu1 %v3215_v29  ;;  %1621 = vmatprep.subr.bf16.mxu0 %v3218_v30 }
 0x360   : > { %2789 = vmatmul.mubr.bf16.vlgmr.msra.gmra.mrb[16].mxu1 %v3812_v61  ;;  %1307 = vmatmul.mubr.bf16.vlgmr.msra.gmra.mrb[0].mxu0 %v792_v31 }
 0x361   : > { %2805 = vmatpush3.bf16.msra.mxu1 %v3215_v29  ;;  %1622 = vmatpush1.bf16.msra.mxu0 %v3216_v32 }
 0x362   : > { %2806 = vmatprep.subr.bf16.mxu1 %v3219_v33  ;;  %2792 = vmatprep.mubr.bf16.mxu1 %v3820_v15 }
 0x363   : > { %1316 = vmatprep.mubr.bf16.mxu0 %v3461_v37  ;;  %1623 = vmatprep.subr.bf16.mxu0 %v3223_v34 }
 0x365   : > { %2807 = vmatpush3.bf16.msra.mxu1 %v3219_v33  ;;  %1624 = vmatpush1.bf16.msra.mxu0 %v3221_v35 }
 0x366   : > { %2808 = vmatprep.subr.bf16.mxu1 %v3220_v0  ;;  %1625 = vmatprep.subr.bf16.mxu0 %v3228_v36 }
 0x368   : > { %2793 = vmatmul.mubr.bf16.gmra.mrb[20].mxu1 %v3828_v23  ;;  %1317 = vmatmul.mubr.bf16.gmra.mrb[4].mxu0 %v3804_v53 }
 0x369   : > { %2809 = vmatpush3.bf16.msra.mxu1 %v3220_v0  ;;  %2796 = vmatprep.mubr.bf16.mxu1 %v3806_v54 }
 0x36a   : > { %2810 = vmatprep.subr.bf16.mxu1 %v3224_v9  ;;  %1326 = vmatprep.mubr.bf16.mxu0 %v3461_v37 }
 0x36b   : > { %1626 = vmatpush1.bf16.msra.mxu0 %v3226_v38 }
 0x36c   : > { %1627 = vmatprep.subr.bf16.mxu0 %v3233_v39 }
 0x36d   : > { %2811 = vmatpush3.bf16.msra.mxu1 %v3224_v9 }
 0x36e   : > { %2812 = vmatprep.subr.bf16.mxu1 %v3225_v40 }
 0x36f   : > { %1628 = vmatpush1.bf16.msra.mxu0 %v3231_v41 }
 0x370   : > { %2797 = vmatmul.mubr.bf16.gmra.mrb[24].mxu1 %v3814_v62  ;;  %1327 = vmatmul.mubr.bf16.gmra.mrb[8].mxu0 %v3812_v61 }
 0x371   : > { %2813 = vmatpush3.bf16.msra.mxu1 %v3225_v40  ;;  %2800 = vmatprep.mubr.bf16.mxu1 %v3822_v16 }
 0x372   : > { %2814 = vmatprep.subr.bf16.mxu1 %v3229_v42  ;;  %1336 = vmatprep.mubr.bf16.mxu0 %v3461_v37 }
 0x373   : > { %1629 = vmatprep.subr.bf16.mxu0 %v3237_v43 }
 0x374   : > { %1630 = vmatpush1.bf16.msra.mxu0 %v3235_v44 }
 0x375   : > { %2815 = vmatpush3.bf16.msra.mxu1 %v3229_v42  ;;  %1631 = vmatprep.subr.bf16.mxu0 %v3242_v45 }
 0x376   : > { %2816 = vmatprep.subr.bf16.mxu1 %v3230_v46 }
 0x378   : > { %2801 = vmatmul.mubr.bf16.gmra.mrb[28].mxu1 %v3830_v24  ;;  %1337 = vmatmul.mubr.bf16.gmra.mrb[12].mxu0 %v3820_v15 }
 0x379   : > { %2817 = vmatpush3.bf16.msra.mxu1 %v3230_v46  ;;  %1346 = vmatprep.mubr.bf16.mxu0 %v3461_v37 }
 0x37a   : > { %2818 = vmatprep.subr.bf16.mxu1 %v3234_v47  ;;  %2820 = vmatprep.mubr.bf16.mxu1 %v792_v31  ;;  %v1879_v31 = vlaneseq }
 0x37b   : > { %1632 = vmatpush1.bf16.msra.mxu0 %v3240_v48 }
 0x37c   : > { %1633 = vmatprep.subr.bf16.mxu0 %v3247_v49  ;;  %v3942_v32 = vshrl.u32 %v1879_v31, 7 }
 0x37d   : > { %2819 = vmatpush3.bf16.msra.mxu1 %v3234_v47 }
 0x37e   : > { %2836 = vmatprep.subr.bf16.mxu1 %v3238_v50  ;;  %v3945_v35 = vadd.s32 8, %v3942_v32  ;;  %vm1882_vm3 = vcmp.eq.s32.totalorder %v3942_v32, 0  ;;  %vm1900_vm4 = vcmp.lt.s32.totalorder %v3942_v32, 1  ;;  %vm1971_vm5 = vcmp.lt.s32.totalorder %v3942_v32, 7  ;;  %v4114_v32 = vld [vmem:[%s4297_s12] ss:$0 sm:$0xff] }
 0x37f   : > { %1634 = vmatpush1.bf16.msra.mxu0 %v3245_v51  ;;  %s3327_s12 = scalar_lea.vmem %s3326_s19, 2048 }
 0x380   : > { %1347 = vmatmul.mubr.bf16.gmra.mrb[16].mxu0 %v3828_v23  ;;  %2821 = vmatmul.mubr.bf16.vlgmr.msra.gmra.mrb[16].mxu1 %v3804_v53  ;;  %v3248_v53 = vld [vmem:[#allocation6 + $0x1e8] ss:$12 sps:$4 sm:$0xff]   ;;  %vm1954_vm6 = vcmp.eq.s32.totalorder %v3945_v35, 15  ;;  %v2241_v35 = vunpack.c.l.bf16 %v3724_v3  ;;  %p3329_p12 = scmp.lt.s32.totalorder %s3327_s12, %s3321_s21 }
 0x381   : > { %2837 = vmatpush3.bf16.msra.mxu1 %v3238_v50  ;;  %1356 = vmatprep.mubr.bf16.mxu0 %v3461_v37 }
 0x382   : > { %2838 = vmatprep.subr.bf16.mxu1 %v3239_v52  ;;  %2824 = vmatprep.mubr.bf16.mxu1 %v3812_v61  ;;  %p3330_p1 = por %p3329_p12, %p3328_p8 }
 0x383   : > { %1635 = vmatprep.subr.bf16.mxu0 %v3252_v55 }
 0x384   : > { %1636 = vmatpush1.bf16.msra.mxu0 %v3250_v56  ;;  %p3331_p6 = pnand %p3330_p1, %p3324_p5 }
 0x385   : > { %2839 = vmatpush3.bf16.msra.mxu1 %v3239_v52 }
 0x386   : > { %2840 = vmatprep.subr.bf16.mxu1 %v3243_v57 }
 0x388   : > { %1357 = vmatmul.mubr.bf16.gmra.mrb[20].mxu0 %v3806_v54  ;;  %2825 = vmatmul.mubr.bf16.gmra.mrb[20].mxu1 %v3820_v15 }
 0x389   : > { %2841 = vmatpush3.bf16.msra.mxu1 %v3243_v57  ;;  %1366 = vmatprep.mubr.bf16.mxu0 %v3461_v37 }
 0x38a   : > { %2842 = vmatprep.subr.bf16.mxu1 %v3244_v58  ;;  %2828 = vmatprep.mubr.bf16.mxu1 %v3828_v23 }
 0x38d   : > { %2843 = vmatpush3.bf16.msra.mxu1 %v3244_v58 }
 0x38e   : > { %2844 = vmatprep.subr.bf16.mxu1 %v3248_v53 }
 0x390   : > { %1367 = vmatmul.mubr.bf16.gmra.mrb[24].mxu0 %v3814_v62  ;;  %2829 = vmatmul.mubr.bf16.gmra.mrb[24].mxu1 %v3806_v54 }
 0x391   : > { %2845 = vmatpush3.bf16.msra.mxu1 %v3248_v53  ;;  %1376 = vmatprep.mubr.bf16.mxu0 %v3461_v37  ;;  %v3970_v53 = vld [vmem:[%s4257_s4] ss:$0 sm:$0xff] }
 0x392   : > { %2846 = vmatprep.subr.bf16.mxu1 %v3249_v59  ;;  %2832 = vmatprep.mubr.bf16.mxu1 %v3814_v62 }
 0x395   : > { %2847 = vmatpush3.bf16.msra.mxu1 %v3249_v59 }
 0x396   : > { %2848 = vmatprep.subr.bf16.mxu1 %v3253_v60 }
 0x398   : > { %1377 = vmatmul.mubr.bf16.gmra.mrb[28].mxu0 %v3822_v16  ;;  %2833 = vmatmul.mubr.bf16.gmra.mrb[28].mxu1 %v3822_v16 }
 0x399   : > { %2849 = vmatpush3.bf16.msra.mxu1 %v3253_v60  ;;  %1653 = vmatprep.mubr.bf16.mxu0 %v3461_v37 }
 0x39a   : > { %2850 = vmatprep.subr.bf16.mxu1 %v3254_v63  ;;  %2852 = vmatprep.mubr.bf16.mxu1 %v3812_v61 }
 0x39d   : > { %2851 = vmatpush3.bf16.msra.mxu1 %v3254_v63 }
 0x39e   : > { %2868 = vmatprep.subr.bf16.mxu1 %v3255_v10 }
 0x3a0   : > { %1654 = vmatmul.mubr.bf16.vlgmr.msra.gmra.mrb[0].mxu0 %v3812_v61  ;;  %2853 = vmatmul.mubr.bf16.vlgmr.msra.gmra.mrb[16].mxu1 %v3820_v15  ;;  %v3256_v61 = vld [vmem:[%s4258_s5 + $0x8] sm:$0xff]  }
 0x3a1   : > { %1663 = vmatprep.mubr.bf16.mxu0 %v3461_v37  ;;  %2856 = vmatprep.mubr.bf16.mxu1 %v3828_v23 }
 0x3a2   : > { %2869 = vmatpush3.bf16.msra.mxu1 %v3255_v10 }
 0x3a3   : > { %2870 = vmatprep.subr.bf16.mxu1 %v3256_v61 }
 0x3a6   : > { %2871 = vmatpush3.bf16.msra.mxu1 %v3256_v61 }
 0x3a8   : > { %1664 = vmatmul.mubr.bf16.gmra.mrb[4].mxu0 %v3820_v15  ;;  %2857 = vmatmul.mubr.bf16.gmra.mrb[20].mxu1 %v3806_v54 }
 0x3a9   : > { %1673 = vmatprep.mubr.bf16.mxu0 %v3461_v37  ;;  %2860 = vmatprep.mubr.bf16.mxu1 %v3814_v62 }
 0x3b0   : > { %1674 = vmatmul.mubr.bf16.gmra.mrb[8].mxu0 %v3828_v23  ;;  %2861 = vmatmul.mubr.bf16.gmra.mrb[24].mxu1 %v3822_v16 }
 0x3b1   : > { %1683 = vmatprep.mubr.bf16.mxu0 %v3461_v37  ;;  %2864 = vmatprep.mubr.bf16.mxu1 %v3830_v24 }
 0x3b8   : > { %1684 = vmatmul.mubr.bf16.gmra.mrb[12].mxu0 %v3806_v54  ;;  %2865 = vmatmul.mubr.bf16.gmra.mrb[28].mxu1 %v1492_v11  ;;  %v3257_v54 = vld [vmem:[%s4258_s5 + $0x10] sm:$0xff]  }
 0x3b9   : > { %1693 = vmatprep.mubr.bf16.mxu0 %v3461_v37  ;;  %2872 = vmatprep.subr.bf16.mxu1 %v3257_v54 }
 0x3ba   : > { %2873 = vmatpush3.bf16.msra.mxu1 %v3257_v54 }
 0x3c0   : > { %1694 = vmatmul.mubr.bf16.gmra.mrb[16].mxu0 %v3814_v62  ;;  %v3258_v62 = vld [vmem:[%s4258_s5 + $0x18] sm:$0xff]  }
 0x3c1   : > { %1703 = vmatprep.mubr.bf16.mxu0 %v3461_v37  ;;  %2874 = vmatprep.subr.bf16.mxu1 %v3258_v62 }
 0x3c2   : > { %2875 = vmatpush3.bf16.msra.mxu1 %v3258_v62 }
 0x3c3   : > { %2876 = vmatprep.subr.bf16.mxu1 %v3259_v12 }
 0x3c6   : > { %2877 = vmatpush3.bf16.msra.mxu1 %v3259_v12 }
 0x3c8   : > { %1704 = vmatmul.mubr.bf16.gmra.mrb[20].mxu0 %v3822_v16 }
 0x3c9   : > { %1713 = vmatprep.mubr.bf16.mxu0 %v3461_v37 }
 0x3d0   : > { %1714 = vmatmul.mubr.bf16.gmra.mrb[24].mxu0 %v3830_v24 }
 0x3d1   : > { %1723 = vmatprep.mubr.bf16.mxu0 %v3461_v37  ;;  %v3260_v37 = vld [vmem:[%s4258_s5 + $0x28] sm:$0xff]  }
 0x3d2   : > { %2878 = vmatprep.subr.bf16.mxu1 %v3260_v37 }
 0x3d3   : > { %2879 = vmatpush3.bf16.msra.mxu1 %v3260_v37 }
 0x3d4   : > { %2880 = vmatprep.subr.bf16.mxu1 %v3261_v13 }
 0x3d7   : > { %2881 = vmatpush3.bf16.msra.mxu1 %v3261_v13 }
 0x3d8   : > { %1724 = vmatmul.mubr.bf16.gmra.mrb[28].mxu0 %v1492_v11  ;;  %2882 = vmatprep.subr.bf16.mxu1 %v3262_v14 }
 0x3db   : > { %2883 = vmatpush3.bf16.msra.mxu1 %v3262_v14 }
 0x413   : > { %v3910_v15 = vpop.f32.mrb[0].mxu1 }
 0x414   : > { %v3912_v16 = vpop.f32.mrb[1].mxu1 }
 0x415   : > { %v3914_v17 = vpop.f32.mrb[2].mxu1 }
 0x416   : > { %v3916_v18 = vpop.f32.mrb[3].mxu1 }
 0x41b   : > { %v3918_v19 = vpop.f32.mrb[4].mxu1 }
 0x41c   : > { %v3920_v20 = vpop.f32.mrb[5].mxu1 }
 0x41d   : > { %v3922_v21 = vpop.f32.mrb[6].mxu1 }
 0x41e   : > { %v3924_v22 = vpop.f32.mrb[7].mxu1 }
 0x423   : > { %v3926_v23 = vpop.f32.mrb[8].mxu1 }
 0x424   : > { %v3928_v24 = vpop.f32.mrb[9].mxu1 }
 0x425   : > { %v3930_v25 = vpop.f32.mrb[10].mxu1 }
 0x426   : > { %v3932_v26 = vpop.f32.mrb[11].mxu1 }
 0x42b   : > { %v3934_v27 = vpop.f32.mrb[12].mxu1 }
 0x42c   : > { %v3936_v28 = vpop.f32.mrb[13].mxu1 }
 0x42d   : > { %v3938_v29 = vpop.f32.mrb[14].mxu1 }
 0x42e   : > { %v3940_v30 = vpop.f32.mrb[15].mxu1 }
 0x473   : > { %v1655_v33 = vpop.f32.mrb[0].mxu0  ;;  %v2854_v34 = vpop.f32.mrb[16].mxu1 }
 0x474   : > { %v1657_v0 = vpop.f32.mrb[1].mxu0  ;;  %v1768_v36 = vpop.f32.mrb[17].mxu1  ;;  %v1884_v39 = vrot.slane %v1655_v33, 7  ;;  %v1956_v40 = vrot.slane %v2854_v34, 1 }
 0x475   : > { %v1659_v9 = vpop.f32.mrb[2].mxu0  ;;  %v2855_v38 = vpop.f32.mrb[18].mxu1  ;;  %v1955_v45 = vrot.slane %v1768_v36, 1 }
 0x476   : > { %v1892_v41 = vrot.slane %v1659_v9, 7  ;;  %v1964_v42 = vrot.slane %v2855_v38, 1  ;;  %v1661_v43 = vpop.f32.mrb[3].mxu0  ;;  %v1771_v44 = vpop.f32.mrb[19].mxu1 }
 0x477   : > { %v1963_v46 = vrot.slane %v1771_v44, 1 }
 0x478   : > { %v1909_v47 = vsel %vm1900_vm4, %v1892_v41, %v1884_v39  ;;  %v1973_v48 = vsel %vm1971_vm5, %v1956_v40, %v1964_v42  ;;  %v1901_v49 = vsel %vm1900_vm4, %v1884_v39, %v1892_v41  ;;  %v1981_v50 = vsel %vm1971_vm5, %v1964_v42, %v1956_v40 }
 0x479   : > { %v1921_v51 = vsel %vm1882_vm3, 0.0, %v1909_v47  ;;  %v1938_v52 = vadd.f32 %v1901_v49, %v1661_v43  ;;  %v1972_v55 = vsel %vm1971_vm5, %v1955_v45, %v1963_v46  ;;  %v1980_v56 = vsel %vm1971_vm5, %v1963_v46, %v1955_v45 }
 0x47a   : > { %v1937_v57 = vadd.f32 %v1921_v51, %v1657_v0  ;;  %v1993_v58 = vsel %vm1954_vm6, 0.0, %v1980_v56  ;;  %v1995_v49 = vsel %vm1954_vm6, 0.0, %v1981_v50 }
 0x47b   : > { %v2009_v59 = vadd.f32 %v1993_v58, %v1938_v52  ;;  %v1665_v60 = vpop.f32.mrb[4].mxu0  ;;  %v2858_v63 = vpop.f32.mrb[20].mxu1 }
 0x47c   : > { %v2008_v10 = vadd.f32 %v1972_v55, %v1937_v57  ;;  %v1667_v61 = vpop.f32.mrb[5].mxu0  ;;  %v1784_v11 = vpop.f32.mrb[21].mxu1  ;;  %v1885_v54 = vrot.slane %v1665_v60, 7  ;;  %v1958_v13 = vrot.slane %v2858_v63, 1 }
 0x47d   : > { %v1669_v62 = vpop.f32.mrb[6].mxu0  ;;  %v2859_v12 = vpop.f32.mrb[22].mxu1  ;;  %v2032_v37 = vadd.f32 %v3970_v53, %v2009_v59  ;;  %v1957_v36 = vrot.slane %v1784_v11, 1 }
 0x47e   : > { %v1893_v14 = vrot.slane %v1669_v62, 7  ;;  %v1966_v31 = vrot.slane %v2859_v12, 1  ;;  %v1671_v33 = vpop.f32.mrb[7].mxu0  ;;  %v1787_v34 = vpop.f32.mrb[23].mxu1  ;;  %v2031_v0 = vadd.f32 %v3970_v53, %v2008_v10 }
 0x47f   : > { %v1965_v9 = vrot.slane %v1787_v34, 1  ;;  %v2048_v38 = vmax.f32 %v2032_v37, 0.0 }
 0x480   : > { %v1910_v39 = vsel %vm1900_vm4, %v1893_v14, %v1885_v54  ;;  %v3978_v40 = vsel %vm1971_vm5, %v1958_v13, %v1966_v31  ;;  %v1902_v41 = vsel %vm1900_vm4, %v1885_v54, %v1893_v14  ;;  %v2047_v42 = vmax.f32 %v2031_v0, 0.0 }
 0x481   : > { %v1923_v43 = vsel %vm1882_vm3, 0.0, %v1910_v39  ;;  %v1940_v44 = vadd.f32 %v1902_v41, %v1671_v33  ;;  %v1974_v45 = vsel %vm1971_vm5, %v1957_v36, %v1965_v9  ;;  %v1982_v46 = vsel %vm1971_vm5, %v1965_v9, %v1957_v36 }
 0x482   : > { %v1939_v47 = vadd.f32 %v1923_v43, %v1667_v61  ;;  %v2063_v51 = vpack.c.bf16 %v2048_v38, %v2047_v42  ;;  %v3992_v52 = vsel %vm1971_vm5, %v1966_v31, %v1958_v13 }
 0x483   : > { %v2011_v55 = vadd.f32 %v1995_v49, %v1940_v44  ;;  %v1675_v56 = vpop.f32.mrb[8].mxu0  ;;  %v2862_v57 = vpop.f32.mrb[24].mxu1 }
 0x484   : > { %v2010_v58 = vadd.f32 %v1973_v48, %v1939_v47  ;;  %v1677_v59 = vpop.f32.mrb[9].mxu0  ;;  %v1800_v60 = vpop.f32.mrb[25].mxu1  ;;  %2884 = vmatprep.mubr.bf16.mxu1 %v2063_v51  ;;  %v1886_v10 = vrot.slane %v1675_v56, 7  ;;  %v1960_v50 = vrot.slane %v2862_v57, 1  ;;  %v1997_v47 = vsel %vm1954_vm6, 0.0, %v1982_v46 }
 0x485   : > { %v2034_v63 = vadd.f32 %v3970_v53, %v2011_v55  ;;  %v1679_v11 = vpop.f32.mrb[10].mxu0  ;;  %v2863_v61 = vpop.f32.mrb[26].mxu1  ;;  %v1959_v31 = vrot.slane %v1800_v60, 1 }
 0x486   : > { %v2033_v54 = vadd.f32 %v3970_v53, %v2010_v58  ;;  %v1894_v62 = vrot.slane %v1679_v11, 7  ;;  %v1968_v12 = vrot.slane %v2863_v61, 1  ;;  %v1681_v37 = vpop.f32.mrb[11].mxu0  ;;  %v1803_v13 = vpop.f32.mrb[27].mxu1 }
 0x487   : > { %v2050_v14 = vmax.f32 %v2034_v63, 0.0  ;;  %v1967_v33 = vrot.slane %v1803_v13, 1 }
 0x488   : > { %v2049_v34 = vmax.f32 %v2033_v54, 0.0  ;;  %v1911_v48 = vsel %vm1900_vm4, %v1894_v62, %v1886_v10  ;;  %v4000_v0 = vsel %vm1971_vm5, %v1960_v50, %v1968_v12  ;;  %v4004_v36 = vsel %vm1971_vm5, %v1968_v12, %v1960_v50 }
 0x489   : > { %v1925_v9 = vsel %vm1882_vm3, 0.0, %v1911_v48  ;;  %v1903_v38 = vsel %vm1900_vm4, %v1886_v10, %v1894_v62  ;;  %v4012_v39 = vsel %vm1971_vm5, %v1959_v31, %v1967_v33  ;;  %v1984_v41 = vsel %vm1971_vm5, %v1967_v33, %v1959_v31 }
 0x48a   : > { %v2064_v42 = vpack.c.bf16 %v2050_v14, %v2049_v34  ;;  %v1941_v43 = vadd.f32 %v1925_v9, %v1677_v59  ;;  %v1942_v44 = vadd.f32 %v1903_v38, %v1681_v37 }
 0x48b   : > { %v1685_v49 = vpop.f32.mrb[12].mxu0  ;;  %v2866_v51 = vpop.f32.mrb[28].mxu1 }
 0x48c   : > { %v2013_v55 = vadd.f32 %v1997_v47, %v1942_v44  ;;  %v1687_v56 = vpop.f32.mrb[13].mxu0  ;;  %v1816_v57 = vpop.f32.mrb[29].mxu1  ;;  %2885 = vmatmul.mubr.bf16.vlgmr.msra.gmra.mrb[32].mxu1 %v2064_v42  ;;  %v2012_v58 = vadd.f32 %v1974_v45, %v1941_v43  ;;  %v1887_v60 = vrot.slane %v1685_v49, 7  ;;  %v1962_v63 = vrot.slane %v2866_v51, 1 }
 0x48d   : > { %v1689_v10 = vpop.f32.mrb[14].mxu0  ;;  %v2867_v11 = vpop.f32.mrb[30].mxu1  ;;  %v1961_v46 = vrot.slane %v1816_v57, 1  ;;  %v1999_v44 = vsel %vm1954_vm6, 0.0, %v3992_v52 }
 0x48e   : > { %v2036_v61 = vadd.f32 %v3970_v53, %v2013_v55  ;;  %v1895_v54 = vrot.slane %v1689_v10, 7  ;;  %v1970_v50 = vrot.slane %v2867_v11, 1  ;;  %v1691_v59 = vpop.f32.mrb[15].mxu0  ;;  %v1819_v62 = vpop.f32.mrb[31].mxu1  ;;  %v2035_v12 = vadd.f32 %v3970_v53, %v2012_v58 }
 0x48f   : > { %v1969_v37 = vrot.slane %v1819_v62, 1 }
 0x490   : > { %v2052_v13 = vmax.f32 %v2036_v61, 0.0  ;;  %v1912_v14 = vsel %vm1900_vm4, %v1895_v54, %v1887_v60  ;;  %v4024_v45 = vsel %vm1971_vm5, %v1962_v63, %v1970_v50  ;;  %v4028_v31 = vsel %vm1971_vm5, %v1970_v50, %v1962_v63 }
 0x491   : > { %v1927_v33 = vsel %vm1882_vm3, 0.0, %v1912_v14  ;;  %v1904_v34 = vsel %vm1900_vm4, %v1887_v60, %v1895_v54  ;;  %v4036_v48 = vsel %vm1971_vm5, %v1961_v46, %v1969_v37  ;;  %v4040_v9 = vsel %vm1971_vm5, %v1969_v37, %v1961_v46 }
 0x492   : > { %v1943_v38 = vadd.f32 %v1927_v33, %v1687_v56  ;;  %v1944_v42 = vadd.f32 %v1904_v34, %v1691_v59  ;;  %v2051_v43 = vmax.f32 %v2035_v12, 0.0 }
 0x493   : > { %v1695_v47 = vpop.f32.mrb[16].mxu0 }
 0x494   : > { %v2015_v49 = vadd.f32 %v1999_v44, %v1944_v42  ;;  %v2918_v51 = vadd.f32 %v1695_v47, %v3910_v15  ;;  %v1697_v55 = vpop.f32.mrb[17].mxu0  ;;  %v2065_v57 = vpack.c.bf16 %v2052_v13, %v2051_v43  ;;  %v2014_v58 = vadd.f32 %v3978_v40, %v1943_v38 }
 0x495   : > { %v2919_v60 = vadd.f32 %v1697_v55, %v3912_v16  ;;  %v1699_v63 = vpop.f32.mrb[18].mxu0 }
 0x496   : > { %v2038_v10 = vadd.f32 %v3970_v53, %v2015_v49  ;;  %2888 = vmatprep.mubr.bf16.mxu1 %v2065_v57  ;;  %v2920_v56 = vadd.f32 %v1699_v63, %v3914_v17  ;;  %v1701_v11 = vpop.f32.mrb[19].mxu0  ;;  %v2037_v61 = vadd.f32 %v3970_v53, %v2014_v58  ;;  %v1888_v50 = vrot.slane %v2918_v51, 7 }
 0x497   : > { %v2921_v52 = vadd.f32 %v1701_v11, %v3916_v18  ;;  %v2001_v18 = vsel %vm1954_vm6, 0.0, %v1984_v41  ;;  %v2003_v63 = vsel %vm1954_vm6, 0.0, %v4004_v36 }
 0x498   : > { %v2054_v54 = vmax.f32 %v2038_v10, 0.0  ;;  %v1896_v15 = vrot.slane %v2920_v56, 7  ;;  %v2053_v59 = vmax.f32 %v2037_v61, 0.0 }
 0x49a   : > { %v1913_v40 = vsel %vm1900_vm4, %v1896_v15, %v1888_v50  ;;  %v1905_v16 = vsel %vm1900_vm4, %v1888_v50, %v1896_v15  ;;  %v2066_v62 = vpack.c.bf16 %v2054_v54, %v2053_v59 }
 0x49b   : > { %v1929_v12 = vsel %vm1882_vm3, 0.0, %v1913_v40  ;;  %v1946_v17 = vadd.f32 %v2921_v52, %v1905_v16  ;;  %v1705_v46 = vpop.f32.mrb[20].mxu0 }
 0x49c   : > { %v1945_v37 = vadd.f32 %v2919_v60, %v1929_v12  ;;  %v2922_v13 = vadd.f32 %v1705_v46, %v3918_v19  ;;  %v1707_v14 = vpop.f32.mrb[21].mxu0  ;;  %2889 = vmatmul.mubr.bf16.gmra.mrb[36].mxu1 %v2066_v62 }
 0x49d   : > { %v2017_v33 = vadd.f32 %v2001_v18, %v1946_v17  ;;  %v2923_v34 = vadd.f32 %v1707_v14, %v3920_v20  ;;  %v1709_v38 = vpop.f32.mrb[22].mxu0  ;;  %v2005_v18 = vsel %vm1954_vm6, 0.0, %v4040_v9 }
 0x49e   : > { %v2924_v42 = vadd.f32 %v1709_v38, %v3922_v21  ;;  %v1711_v43 = vpop.f32.mrb[23].mxu0  ;;  %v2016_v44 = vadd.f32 %v4012_v39, %v1945_v37  ;;  %v1889_v51 = vrot.slane %v2922_v13, 7 }
 0x49f   : > { %v2925_v47 = vadd.f32 %v1711_v43, %v3924_v22  ;;  %v2040_v49 = vadd.f32 %v3970_v53, %v2017_v33 }
 0x4a0   : > { %v1897_v55 = vrot.slane %v2924_v42, 7  ;;  %v2039_v41 = vadd.f32 %v3970_v53, %v2016_v44 }
 0x4a1   : > { %v2056_v19 = vmax.f32 %v2040_v49, 0.0 }
 0x4a2   : > { %v1914_v57 = vsel %vm1900_vm4, %v1897_v55, %v1889_v51  ;;  %v1906_v20 = vsel %vm1900_vm4, %v1889_v51, %v1897_v55  ;;  %v2055_v58 = vmax.f32 %v2039_v41, 0.0 }
 0x4a3   : > { %v1931_v21 = vsel %vm1882_vm3, 0.0, %v1914_v57  ;;  %v1948_v39 = vadd.f32 %v2925_v47, %v1906_v20  ;;  %v1715_v60 = vpop.f32.mrb[24].mxu0 }
 0x4a4   : > { %v1947_v22 = vadd.f32 %v2923_v34, %v1931_v21  ;;  %v2926_v10 = vadd.f32 %v1715_v60, %v3926_v23  ;;  %v1717_v56 = vpop.f32.mrb[25].mxu0  ;;  %v2067_v11 = vpack.c.bf16 %v2056_v19, %v2055_v58 }
 0x4a5   : > { %v2019_v61 = vadd.f32 %v2003_v63, %v1948_v39  ;;  %v2927_v52 = vadd.f32 %v1717_v56, %v3928_v24  ;;  %v1719_v54 = vpop.f32.mrb[26].mxu0 }
 0x4a6   : > { %v2928_v50 = vadd.f32 %v1719_v54, %v3930_v25  ;;  %v1721_v15 = vpop.f32.mrb[27].mxu0  ;;  %2892 = vmatprep.mubr.bf16.mxu1 %v2067_v11  ;;  %v2018_v59 = vadd.f32 %v4000_v0, %v1947_v22  ;;  %v1890_v62 = vrot.slane %v2926_v10, 7  ;;  %v2239_v11 = vunpack.c.l.bf16 %v3718_v1 }
 0x4a7   : > { %v2929_v40 = vadd.f32 %v1721_v15, %v3932_v26  ;;  %v2042_v16 = vadd.f32 %v3970_v53, %v2019_v61 }
 0x4a8   : > { %v1898_v36 = vrot.slane %v2928_v50, 7  ;;  %v2041_v23 = vadd.f32 %v3970_v53, %v2018_v59  ;;  %v2240_v50 = vunpack.c.h.bf16 %v3718_v1 }
 0x4a9   : > { %v2058_v12 = vmax.f32 %v2042_v16, 0.0 }
 0x4aa   : > { %v1915_v17 = vsel %vm1900_vm4, %v1898_v36, %v1890_v62  ;;  %v1907_v24 = vsel %vm1900_vm4, %v1890_v62, %v1898_v36  ;;  %v2057_v25 = vmax.f32 %v2041_v23, 0.0 }
 0x4ab   : > { %v1933_v46 = vsel %vm1882_vm3, 0.0, %v1915_v17  ;;  %v1950_v0 = vadd.f32 %v2929_v40, %v1907_v24  ;;  %v1725_v37 = vpop.f32.mrb[28].mxu0 }
 0x4ac   : > { %v1949_v26 = vadd.f32 %v2927_v52, %v1933_v46  ;;  %v2930_v13 = vadd.f32 %v1725_v37, %v3934_v27  ;;  %v1727_v14 = vpop.f32.mrb[29].mxu0  ;;  %v2068_v33 = vpack.c.bf16 %v2058_v12, %v2057_v25  ;;  %v2242_v52 = vunpack.c.h.bf16 %v3724_v3 }
 0x4ad   : > { %v2021_v34 = vadd.f32 %v2005_v18, %v1950_v0  ;;  %v2931_v38 = vadd.f32 %v1727_v14, %v3936_v28  ;;  %v1729_v42 = vpop.f32.mrb[30].mxu0  ;;  %v2245_v37 = vunpack.c.l.bf16 %v3752_v7  ;;  %v2243_v18 = vunpack.c.l.bf16 %v3732_v5 }
 0x4ae   : > { %v2932_v43 = vadd.f32 %v1729_v42, %v3938_v29  ;;  %v1731_v44 = vpop.f32.mrb[31].mxu0  ;;  %2893 = vmatmul.mubr.bf16.gmra.mrb[40].mxu1 %v2068_v33  ;;  %v2020_v47 = vadd.f32 %v4036_v48, %v1949_v26  ;;  %v1891_v55 = vrot.slane %v2930_v13, 7  ;;  %v2246_v33 = vunpack.c.h.bf16 %v3752_v7 }
 0x4af   : > { %v2933_v49 = vadd.f32 %v1731_v44, %v3940_v30  ;;  %v2044_v51 = vadd.f32 %v3970_v53, %v2021_v34  ;;  %v2007_v30 = vsel %vm1954_vm6, 0.0, %v4028_v31  ;;  %v2244_v42 = vunpack.c.h.bf16 %v3732_v5 }
 0x4b0   : > { %v1899_v9 = vrot.slane %v2932_v43, 7  ;;  %v2043_v27 = vadd.f32 %v3970_v53, %v2020_v47 }
 0x4b1   : > { %v2060_v41 = vmax.f32 %v2044_v51, 0.0 }
 0x4b2   : > { %v1916_v19 = vsel %vm1900_vm4, %v1899_v9, %v1891_v55  ;;  %v1908_v28 = vsel %vm1900_vm4, %v1891_v55, %v1899_v9  ;;  %v2059_v29 = vmax.f32 %v2043_v27, 0.0 }
 0x4b3   : > { %v1935_v57 = vsel %vm1882_vm3, 0.0, %v1916_v19  ;;  %v1952_v48 = vadd.f32 %v2933_v49, %v1908_v28 }
 0x4b4   : > { %v1951_v20 = vadd.f32 %v2931_v38, %v1935_v57  ;;  %v2069_v58 = vpack.c.bf16 %v2060_v41, %v2059_v29 }
 0x4b5   : > { %v2023_v21 = vadd.f32 %v2007_v30, %v1952_v48  ;;  %v2249_v48 = vunpack.c.l.bf16 %v3729_v4  ;;  %v2247_v30 = vunpack.c.l.bf16 %v3721_v2 }
 0x4b6   : > { %2896 = vmatprep.mubr.bf16.mxu1 %v2069_v58  ;;  %v2022_v39 = vadd.f32 %v4024_v45, %v1951_v20 }
 0x4b7   : > { %v2046_v60 = vadd.f32 %v3970_v53, %v2023_v21 }
 0x4b8   : > { %v2045_v22 = vadd.f32 %v3970_v53, %v2022_v39  ;;  %v2250_v39 = vunpack.c.h.bf16 %v3729_v4 }
 0x4b9   : > { %v2062_v63 = vmax.f32 %v2046_v60, 0.0 }
 0x4ba   : > { %v2061_v10 = vmax.f32 %v2045_v22, 0.0 }
 0x4bc   : > { %v2070_v56 = vpack.c.bf16 %v2062_v63, %v2061_v10  ;;  %v2248_v63 = vunpack.c.h.bf16 %v3721_v2 }
 0x4be   : > { %2897 = vmatmul.mubr.bf16.gmra.mrb[44].mxu1 %v2070_v56 }
 0x55f   : > { %v2886_v31 = vpop.f32.mrb[32].mxu1 }
 0x560   : > { %v2185_v45 = vadd.f32 %v2886_v31, %v4114_v32  ;;  %v2176_v61 = vpop.f32.mrb[33].mxu1 }
 0x561   : > { %v2177_v53 = vadd.f32 %v4114_v32, %v2176_v61  ;;  %v2887_v54 = vpop.f32.mrb[34].mxu1 }
 0x562   : > { %v2257_v15 = vadd.f32 %v2241_v35, %v2185_v45  ;;  %v2188_v59 = vadd.f32 %v2887_v54, %v4114_v32  ;;  %v2179_v40 = vpop.f32.mrb[35].mxu1 }
 0x563   : > { %v2255_v16 = vadd.f32 %v2239_v11, %v2177_v53  ;;  %v2180_v62 = vadd.f32 %v4114_v32, %v2179_v40  ;;  %v2253_v40 = vunpack.c.l.bf16 %v3755_v8 }
 0x564   : > { %v2273_v36 = vmax.f32 %v2257_v15, 0.0  ;;  %v2258_v23 = vadd.f32 %v2242_v52, %v2188_v59 }
 0x565   : > { %v2271_v3 = vmax.f32 %v2255_v16, 0.0  ;;  %v2256_v12 = vadd.f32 %v2240_v50, %v2180_v62  ;;  %v2251_v62 = vunpack.c.l.bf16 %v3735_v6 }
 0x566   : > { %v2650_v17 = vpack.c.bf16 %v2273_v36, %v2273_v36  ;;  %v2274_v24 = vmax.f32 %v2258_v23, 0.0 }
 0x567   : > { %v2648_v25 = vpack.c.bf16 %v2271_v3, %v2271_v3  ;;  %v2272_v46 = vmax.f32 %v2256_v12, 0.0  ;;  %v2254_v3 = vunpack.c.h.bf16 %v3755_v8 }
 0x568   : > { %2354 = vst.msk [vmem:[%s3783_s23 + $0x8] sm:$0xf] %vm2351_vm7, %v2650_v17  ;;  %v2651_v1 = vpack.c.bf16 %v2274_v24, %v2274_v24  ;;  %v2252_v24 = vunpack.c.h.bf16 %v3735_v6 }
 0x569   : > { %2352 = vst.msk [vmem:[%s3783_s23] sm:$0xf] %vm2351_vm7, %v2648_v25  ;;  %v2649_v0 = vpack.c.bf16 %v2272_v46, %v2272_v46 }
 0x56a   : > { %2355 = vst.msk [vmem:[%s3783_s23 + $0xc] sm:$0xf] %vm2351_vm7, %v2651_v1 }
 0x56b   : > { %2353 = vst.msk [vmem:[%s3783_s23 + $0x4] sm:$0xf] %vm2351_vm7, %v2649_v0 }
 0x56f   : > { %v2890_v26 = vpop.f32.mrb[36].mxu1 }
 0x570   : > { %v2201_v13 = vadd.f32 %v2890_v26, %v4114_v32  ;;  %v2192_v14 = vpop.f32.mrb[37].mxu1 }
 0x571   : > { %v2193_v34 = vadd.f32 %v4114_v32, %v2192_v14  ;;  %v2891_v38 = vpop.f32.mrb[38].mxu1 }
 0x572   : > { %v2261_v43 = vadd.f32 %v2245_v37, %v2201_v13  ;;  %v2204_v44 = vadd.f32 %v2891_v38, %v4114_v32  ;;  %v2195_v47 = vpop.f32.mrb[39].mxu1 }
 0x573   : > { %v2259_v49 = vadd.f32 %v2243_v18, %v2193_v34  ;;  %v2196_v51 = vadd.f32 %v4114_v32, %v2195_v47 }
 0x574   : > { %v2277_v55 = vmax.f32 %v2261_v43, 0.0  ;;  %v2262_v9 = vadd.f32 %v2246_v33, %v2204_v44 }
 0x575   : > { %v2275_v27 = vmax.f32 %v2259_v49, 0.0  ;;  %v2260_v7 = vadd.f32 %v2244_v42, %v2196_v51 }
 0x576   : > { %v2654_v41 = vpack.c.bf16 %v2277_v55, %v2277_v55  ;;  %v2278_v19 = vmax.f32 %v2262_v9, 0.0 }
 0x577   : > { %v2652_v28 = vpack.c.bf16 %v2275_v27, %v2275_v27  ;;  %v2276_v29 = vmax.f32 %v2260_v7, 0.0 }
 0x578   : > { %2358 = vst.msk [vmem:[%s3783_s23 + $0x18] sm:$0xf] %vm2351_vm7, %v2654_v41  ;;  %v2655_v5 = vpack.c.bf16 %v2278_v19, %v2278_v19 }
 0x579   : > { %2356 = vst.msk [vmem:[%s3783_s23 + $0x10] sm:$0xf] %vm2351_vm7, %v2652_v28  ;;  %v2653_v57 = vpack.c.bf16 %v2276_v29, %v2276_v29 }
 0x57a   : > { %2359 = vst.msk [vmem:[%s3783_s23 + $0x1c] sm:$0xf] %vm2351_vm7, %v2655_v5 }
 0x57b   : > { %2357 = vst.msk [vmem:[%s3783_s23 + $0x14] sm:$0xf] %vm2351_vm7, %v2653_v57 }
 0x581   : > { %v2894_v20 = vpop.f32.mrb[40].mxu1 }
 0x582   : > { %v2217_v58 = vadd.f32 %v2894_v20, %v4114_v32  ;;  %v2208_v21 = vpop.f32.mrb[41].mxu1 }
 0x583   : > { %v2209_v60 = vadd.f32 %v4114_v32, %v2208_v21  ;;  %v2895_v22 = vpop.f32.mrb[42].mxu1 }
 0x584   : > { %v2265_v10 = vadd.f32 %v2249_v48, %v2217_v58  ;;  %v2220_v56 = vadd.f32 %v2895_v22, %v4114_v32  ;;  %v2211_v35 = vpop.f32.mrb[43].mxu1 }
 0x585   : > { %v2263_v31 = vadd.f32 %v2247_v30, %v2209_v60  ;;  %v2212_v11 = vadd.f32 %v4114_v32, %v2211_v35 }
 0x586   : > { %v2281_v45 = vmax.f32 %v2265_v10, 0.0  ;;  %v2266_v61 = vadd.f32 %v2250_v39, %v2220_v56 }
 0x587   : > { %v2279_v4 = vmax.f32 %v2263_v31, 0.0  ;;  %v2264_v52 = vadd.f32 %v2248_v63, %v2212_v11 }
 0x588   : > { %v2658_v53 = vpack.c.bf16 %v2281_v45, %v2281_v45  ;;  %v2282_v54 = vmax.f32 %v2266_v61, 0.0 }
 0x589   : > { %v2656_v50 = vpack.c.bf16 %v2279_v4, %v2279_v4  ;;  %v2280_v2 = vmax.f32 %v2264_v52, 0.0 }
 0x58a   : > { %2362 = vst.msk [vmem:[%s3783_s23 + $0x28] sm:$0xf] %vm2351_vm7, %v2658_v53  ;;  %v2659_v15 = vpack.c.bf16 %v2282_v54, %v2282_v54 }
 0x58b   : > { %2360 = vst.msk [vmem:[%s3783_s23 + $0x20] sm:$0xf] %vm2351_vm7, %v2656_v50  ;;  %v2657_v59 = vpack.c.bf16 %v2280_v2, %v2280_v2 }
 0x58c   : > { %2363 = vst.msk [vmem:[%s3783_s23 + $0x2c] sm:$0xf] %vm2351_vm7, %v2659_v15 }
 0x58d   : > { %2361 = vst.msk [vmem:[%s3783_s23 + $0x24] sm:$0xf] %vm2351_vm7, %v2657_v59 }
 0x591   : > { %v2898_v16 = vpop.f32.mrb[44].mxu1 }
 0x592   : > { %v2233_v36 = vadd.f32 %v2898_v16, %v4114_v32  ;;  %v2224_v23 = vpop.f32.mrb[45].mxu1 }
 0x593   : > { %v2225_v12 = vadd.f32 %v4114_v32, %v2224_v23  ;;  %v2899_v17 = vpop.f32.mrb[46].mxu1 }
 0x594   : > { %v2269_v25 = vadd.f32 %v2253_v40, %v2233_v36  ;;  %v2236_v46 = vadd.f32 %v2899_v17, %v4114_v32  ;;  %v2227_v1 = vpop.f32.mrb[47].mxu1 }
 0x595   : > { %v2267_v0 = vadd.f32 %v2251_v62, %v2225_v12  ;;  %v2228_v37 = vadd.f32 %v4114_v32, %v2227_v1 }
 0x596   : > { %v2285_v26 = vmax.f32 %v2269_v25, 0.0  ;;  %v2270_v18 = vadd.f32 %v2254_v3, %v2236_v46 }
 0x597   : > { %v2283_v8 = vmax.f32 %v2267_v0, 0.0  ;;  %v2268_v13 = vadd.f32 %v2252_v24, %v2228_v37 }
 0x598   : > { %v2662_v6 = vpack.c.bf16 %v2285_v26, %v2285_v26  ;;  %v2286_v14 = vmax.f32 %v2270_v18, 0.0 }
 0x599   : > { %v2660_v33 = vpack.c.bf16 %v2283_v8, %v2283_v8  ;;  %v2284_v34 = vmax.f32 %v2268_v13, 0.0 }
 0x59a   : > { %2366 = vst.msk [vmem:[%s3783_s23 + $0x38] sm:$0xf] %vm2351_vm7, %v2662_v6  ;;  %v2663_v38 = vpack.c.bf16 %v2286_v14, %v2286_v14 }
 0x59b   : > { %2364 = vst.msk [vmem:[%s3783_s23 + $0x30] sm:$0xf] %vm2351_vm7, %v2660_v33  ;;  %v2661_v32 = vpack.c.bf16 %v2284_v34, %v2284_v34 }
 0x59c   : > { %2367 = vst.msk [vmem:[%s3783_s23 + $0x3c] sm:$0xf] %vm2351_vm7, %v2663_v38 }
 0x59d   : > { %2365 = vst.msk [vmem:[%s3783_s23 + $0x34] sm:$0xf] %vm2351_vm7, %v2661_v32 }
 0x59e   : > { %3334 = shalt.err (!%p3331_p6)
}
 0x59f   : > { %s3335_s8 = scalar_lea.hbm %s4180_s17, 1024  ;;  %s3339_s16 = scalar_lea.hbm %s4300_s6, 4096 }
 0x5a0   : > { %p3336_p10 = scmp.ne.s32.totalorder %s4180_s17, %s3335_s8  ;;  %p3340_p7 = scmp.lt.u32.totalorder %s4180_s17, %s4300_s6 }
 0x5a1   : > { %p3341_p9 = scmp.lt.u32.totalorder %s3339_s16, %s3335_s8  ;;  %p3343_p13 = scmp.lt.u32.totalorder %s3335_s8, %s4180_s17 }
 0x5a2   : > { %p3337_p3 = pnand %p3336_p10, %p4301_p0 }
 0x5a3   : > { %p3342_p11 = por %p3341_p9, %p3340_p7 }
 0x5a4   : > { %p3338_p4 = pneg %p3337_p3 }
 0x5a5   : > { %p3344_p2 = por %p3343_p13, %p3342_p11 }
 0x5a7   : > { %p3345_p5 = pnand %p3344_p2, %p3338_p4 }
 0x5a9   : > { %3348 = shalt.err (!%p3345_p5)
}
 0x5aa   : > { %s3463_s30 = smov 64   ;;  %s3464_s27 = smov 4  }
 0x5ab   : > { %3020 = dma.vmem_to_hbm [thread:$0]  (%p4301_p0), %s4182_s14, 1024, %s4180_s17, %s4192_s22, %s3463_s30, %s3463_s30, %s3464_s27  }
 0x5ac PF: > { %s4302_s7 = sld [smem:[#allocation12_spill]]  ;;  %s4303_s21 = sld [smem:[#allocation16_spill]] }
 0x5ad   : > { %p3037_p8 = scmp.ge.s32.totalorder %s3447_s11, 2 }
 0x5b2   : > { %s2400_s15 = sand.u32 1, %s4302_s7   ;;  %p4304_p12 = scmp.ne.s32.totalorder %s4303_s21, 0 }
 0x5b3   : > { %s2401_s19 = scalar_lea.sflag [#allocation5], %s2400_s15 }
 0x5b4   : > { %p3031_p1 = pnand %p3037_p8, %p4304_p12 }
 0x5b6   : > { %3402 = dma.done.wait (!%p3031_p1), %s2401_s19, 1024  }
 0x5b7   : > { %3404 = vsyncadd (!%p3031_p1), %s2401_s19, 4294966272  ;;  %s24_s11 = sadd.s32 1, %s3447_s11   ;;  %s4305_s30 = sld [smem:[#allocation14_spill]] }
 0x5b8   : > { %p21_p6 = scmp.ge.s32.totalorder %s24_s11, 6   ;;  %s4306_s14 = sld [smem:[#allocation17_spill]] }
 0x5b9   : > { %s4307_s18 = sld [smem:[#allocation18_spill]]  ;;  %s4308_s24 = smov %s3411_s25 }
 0x5ba   : > { %s4309_s25 = smov %s3415_s26  ;;  %s4310_s26 = smov %s3642_s9 }
 0x5bb   : > { %s4311_s27 = smov %s3423_s28  ;;  %s4312_s28 = smov %s3427_s29 }
 0x5bc   : > { %s4313_s29 = smov %s3637_s3  ;;  %s4314_s8 = smov %s3443_s10 }
 0x5bd   :  { %23 = sbr.rel (!%p21_p6) target bundleno = 14 (0xe), region = 120 }
 0x5be   : > { %s4315_s9 = smov %s4306_s14 }
 0x5bf   : > { %s4316_s10 = smov %s4307_s18 }
 0x5c4   :  { %2406 = vsyncpa [#allocation4], 1 }
 0x5c5   :  { %2408 = vsyncpa [#allocation4 + $0x1], 1 }
 0x5c6   :  { %2409 = vsyncpa [#allocation7], 1 }
 0x5c7   :  { %2410 = vsyncpa [#allocation5], 1 }
 0x5c8   :  { %2412 = vsyncpa [#allocation5 + $0x1], 1 }

</bundles_post_ra>
